<compile_context>
chip_gen: v5e
topology: v5e:2x2
jax: 0.10.0
libtpu: 0.0.40
codegen_flags: <defaults>
</compile_context>

<pallas_src>
import random

import jax
import jax.numpy as jnp
from jax.experimental import pallas as pl
from jax.experimental.pallas import tpu as pltpu

FILTERS = 12
OUT_CH = 4
IN_CH = 1
KS_CHOICES = [3, 7, 5, 9, 11]
BN_EPS = 1e-5


def init_params(key):
    """Deterministic synthetic parameters matching the module's __init__ shapes."""
    random.seed(0)  # mirrors random.choices(...) in __init__, made deterministic
    ks = sorted(random.choices(KS_CHOICES, k=FILTERS))
    keys = jax.random.split(key, FILTERS + 4)
    kernels = [
        jax.random.normal(keys[i], (OUT_CH, IN_CH, ks[i]), jnp.float32)
        for i in range(FILTERS)
    ]
    # attention_module: Linear(256,128) -> ReLU -> Linear(128, filters)
    w1 = jax.random.normal(keys[FILTERS + 0], (128, 256), jnp.float32) / jnp.sqrt(256.0)
    b1 = jax.random.normal(keys[FILTERS + 1], (128,), jnp.float32) * 0.01
    w2 = jax.random.normal(keys[FILTERS + 2], (FILTERS, 128), jnp.float32) / jnp.sqrt(128.0)
    b2 = jax.random.normal(keys[FILTERS + 3], (FILTERS,), jnp.float32) * 0.01
    gamma = jnp.ones((OUT_CH,), jnp.float32)   # BatchNorm1d weight init
    beta = jnp.zeros((OUT_CH,), jnp.float32)   # BatchNorm1d bias init
    return dict(ks=ks, kernels=kernels, w1=w1, b1=b1, w2=w2, b2=b2,
                gamma=gamma, beta=beta)


def dynamic_conv_forward(x, params):
    N, C, L = x.shape
    assert C == IN_CH
    # TODO(synk): general AdaptiveAvgPool1d(256) for L % 256 != 0 (non-uniform bins).
    assert L % 256 == 0, "this script implements AdaptiveAvgPool1d(256) for L % 256 == 0"

    ks = params["ks"]
    kmax, kmin = max(ks), min(ks)
    F = FILTERS
    T = L - kmin + 1              # max_seq_len of the reference module
    TS = L - kmax + 1             # first position where filter validity differs
    TAIL_W = kmax - kmin          # == T - TS
    TP = ((T + 127) // 128) * 128  # lane-dense padded output length
    R = kmax * C                  # packed taps per filter: r = j*C + c
    group_sizes = sorted(set(ks))
    G = len(group_sizes)
    gidx = {k: g for g, k in enumerate(group_sizes)}
    NO = N * OUT_CH
    group_list = list(group_sizes)
    inv_cnt = 1.0 / float(N * T)

    # ---------------- glue (plain JAX): pack operands into TPU-friendly layouts ----
    # attention-MLP input: adaptive avg pool of x[0,0] (only y[0][0][i] is consumed),
    # broadcast to NO rows so every in-kernel matmul has M = NO (no M=1 matvecs).
    p_row = x[0, 0].reshape(256, L // 256).mean(axis=1).reshape(1, 256)
    p_blk = jnp.broadcast_to(p_row, (NO, 256))
    w1t = params["w1"].T                       # (256, 128)
    b1r = params["b1"].reshape(1, 128)
    w2t = params["w2"].T                       # (128, F)
    b2r = params["b2"].reshape(1, F)

    # Kbig[s, i*R + j*C + c] = kernels[i][o(s), c, j]  (0 for j >= ks[i]); s = n*O + o.
    blocks = []
    for i in range(F):
        ki = jnp.transpose(params["kernels"][i], (2, 1, 0)).reshape(ks[i] * C, OUT_CH)
        ki = jnp.pad(ki, ((0, R - ks[i] * C), (0, 0)))          # (R, O)
        blocks.append(jnp.tile(ki.T, (N, 1)))                   # (NO, R)
    kbig = jnp.concatenate(blocks, axis=1)                      # (NO, F*R)

    # Rrow[i, i'*R + r] = delta(i, i'): expands scales along the packed tap axis.
    rrow = jnp.repeat(jnp.eye(F, dtype=jnp.float32), R, axis=1)  # (F, F*R)

    # GEye: block column g<G selects the filters of kernel-size group g; the last
    # block column (g == G) selects every filter (the combined weights).
    eyeR = jnp.eye(R, dtype=jnp.float32)
    rows = []
    for i in range(F):
        rb = jnp.zeros((R, (G + 1) * R), jnp.float32)
        g = gidx[ks[i]]
        rb = rb.at[:, g * R:(g + 1) * R].set(eyeR)
        rb = rb.at[:, G * R:(G + 1) * R].set(eyeR)
        rows.append(rb)
    geye = jnp.concatenate(rows, axis=0)                        # (F*R, (G+1)*R)

    # Pre-shifted, batch/out_ch-packed input stack:
    # xs[j*C + c, n*O + o, t] = x[n, c, t + j]  (right-zero-padded past L).
    pad_amt = TP + kmax - 1 - L
    xe = jnp.pad(x, ((0, 0), (0, 0), (0, pad_amt)))
    shifts = jnp.stack([xe[:, :, j:j + TP] for j in range(kmax)], axis=0)  # (kmax,N,C,TP)
    xs = jnp.transpose(shifts, (0, 2, 1, 3)).reshape(R, N, TP)
    xs = jnp.repeat(xs, OUT_CH, axis=1)                                    # (R, NO, TP)

    # BatchNorm helpers on the packed sublane axis.
    oidx = jnp.arange(NO) % OUT_CH
    chan_mat = (oidx[:, None] == oidx[None, :]).astype(jnp.float32)        # (NO, NO)
    gamma_col = jnp.tile(params["gamma"], N).reshape(NO, 1)
    beta_col = jnp.tile(params["beta"], N).reshape(NO, 1)

    def kernel(p_ref, w1t_ref, b1_ref, w2t_ref, b2_ref, rrow_ref, kbig_ref,
               geye_ref, chan_ref, gamma_ref, beta_ref, xs_ref, out_ref, acc_ref):
        f32 = jnp.float32
        # ---- attention MLP on the MXU + softmax over the filter axis (lanes) ----
        h = jnp.dot(p_ref[...], w1t_ref[...], preferred_element_type=f32)     # (NO,128)
        h = jnp.maximum(h + b1_ref[...], 0.0)
        logits = jnp.dot(h, w2t_ref[...], preferred_element_type=f32) + b2_ref[...]
        m = jnp.max(logits, axis=1, keepdims=True)
        e = jnp.exp(logits - m)
        scales = e * pl.reciprocal(jnp.sum(e, axis=1, keepdims=True), approx=True)

        # ---- fold softmax scales into per-group + combined tap weights (MXU) ----
        rep = jnp.dot(scales, rrow_ref[...], preferred_element_type=f32)      # (NO,F*R)
        wall = jnp.dot(kbig_ref[...] * rep, geye_ref[...],
                       preferred_element_type=f32)                            # (NO,(G+1)*R)

        # ---- ONE combined R-tap valid conv on the packed (N*OUT_CH, TP) slab ----
        acc = jnp.zeros((NO, TP), f32)
        for r in range(R):
            acc = acc + xs_ref[r] * wall[:, G * R + r:G * R + r + 1]
        acc_ref[...] = acc

        # ---- tail fixup: last (kmax-kmin) positions honor per-filter validity ----
        if TAIL_W > 0:
            u = jax.lax.broadcasted_iota(jnp.int32, (NO, TAIL_W), 1)
            tail = jnp.zeros((NO, TAIL_W), f32)
            for g, kg in enumerate(group_list):
                if kg == kmax:          # largest kernels contribute nothing in the tail
                    continue
                tg = jnp.zeros((NO, TAIL_W), f32)
                for r in range(kg * C):
                    tg = tg + (xs_ref[r, :, TS:TS + TAIL_W]
                               * wall[:, g * R + r:g * R + r + 1])
                tail = tail + jnp.where(u < kmax - kg, tg, 0.0)
            acc_ref[:, TS:T] = tail

        # ---- BatchNorm1d (training batch stats over the T valid lanes) + ReLU ----
        y = acc_ref[...]
        lane = jax.lax.broadcasted_iota(jnp.int32, (NO, TP), 1)
        ym = jnp.where(lane < T, y, 0.0)
        ch = jnp.dot(chan_ref[...], ym, preferred_element_type=f32)           # per-chan sums
        chsq = jnp.dot(chan_ref[...], ym * ym, preferred_element_type=f32)
        mean = jnp.sum(ch, axis=1, keepdims=True) * inv_cnt                   # (NO,1)
        ex2 = jnp.sum(chsq, axis=1, keepdims=True) * inv_cnt
        var = ex2 - mean * mean                                               # biased var
        inv_std = jax.lax.rsqrt(var + BN_EPS)
        out = (y - mean) * inv_std * gamma_ref[...] + beta_ref[...]
        out_ref[...] = jnp.maximum(out, 0.0)

    inputs = (p_blk, w1t, b1r, w2t, b2r, rrow, kbig, geye, chan_mat,
              gamma_col, beta_col, xs)

    def full_spec(shape):
        nd = len(shape)
        return pl.BlockSpec(shape, lambda i, _nd=nd: (0,) * _nd)

    flops = (2 * NO * (256 * 128 + 128 * F)                     # MLP
             + 2 * NO * (F * F * R + F * R * (G + 1) * R)       # scale fold
             + 2 * NO * TP * R                                  # combined conv
             + 2 * NO * TAIL_W * sum(k * C for k in group_list) # tail fixup
             + 4 * NO * NO * TP + 8 * NO * TP)                  # BN + ReLU
    bytes_accessed = sum(int(a.size) * 4 for a in inputs) + NO * TP * 4

    out = pl.pallas_call(
        kernel,
        out_shape=jax.ShapeDtypeStruct((NO, TP), jnp.float32),
        grid=(1,),
        in_specs=[full_spec(a.shape) for a in inputs],
        out_specs=full_spec((NO, TP)),
        scratch_shapes=[pltpu.VMEM((NO, TP), jnp.float32)],
        compiler_params=pltpu.CompilerParams(dimension_semantics=("arbitrary",)),
        cost_estimate=pl.CostEstimate(flops=int(flops),
                                      transcendentals=int(NO * (F + 2)),
                                      bytes_accessed=int(bytes_accessed)),
    )(*inputs)

    return out.reshape(N, OUT_CH, TP)[:, :, :T]


def reference_forward(x, params):
    """Pure-JAX reference reproducing the PyTorch forward (training-mode BN)."""
    N, C, L = x.shape
    ks = params["ks"]
    pooled = x.reshape(N, C, 256, L // 256).mean(-1)
    h = jax.nn.relu(pooled @ params["w1"].T + params["b1"])
    y = jax.nn.softmax(h @ params["w2"].T + params["b2"], axis=2)
    scales = y[0, 0]
    T = L - min(ks) + 1
    acc = jnp.zeros((N, OUT_CH, T), jnp.float32)
    for i in range(FILTERS):
        w = params["kernels"][i] * scales[i]
        o = jax.lax.conv_general_dilated(
            x, w, window_strides=(1,), padding="VALID",
            dimension_numbers=("NCH", "OIH", "NCH"))
        o = jnp.pad(o, ((0, 0), (0, 0), (0, T - o.shape[-1])))
        acc = acc + o
    mean = acc.mean(axis=(0, 2), keepdims=True)
    var = ((acc - mean) ** 2).mean(axis=(0, 2), keepdims=True)
    normed = (acc - mean) / jnp.sqrt(var + BN_EPS)
    g = params["gamma"].reshape(1, -1, 1)
    b = params["beta"].reshape(1, -1, 1)
    return jax.nn.relu(normed * g + b)


if __name__ == "__main__":
    key = jax.random.PRNGKey(0)
    pkey, xkey = jax.random.split(key)
    params = init_params(pkey)

    # x: (batch=2, in_channel=1, length=512)  — NCL, PyTorch conv1d layout
    x = jax.random.normal(xkey, (2, IN_CH, 512), jnp.float32)

    out = dynamic_conv_forward(x, params)
    out = jax.block_until_ready(out)

    ref = reference_forward(x, params)
    assert out.shape == ref.shape, (out.shape, ref.shape)
    max_err = float(jnp.max(jnp.abs(out - ref)))
    assert jnp.allclose(out, ref, rtol=2e-2, atol=2e-2), f"max abs err = {max_err}"

    print("KERNEL_OK")
</pallas_src>

<mosaic_0001>
module attributes {stable_mosaic.version = 11 : i64} {
  func.func @kernel(%arg0: i32, %arg1: memref<8x256xf32, #tpu.memory_space<vmem>>, %arg2: memref<256x128xf32, #tpu.memory_space<vmem>>, %arg3: memref<1x128xf32, #tpu.memory_space<vmem>>, %arg4: memref<128x12xf32, #tpu.memory_space<vmem>>, %arg5: memref<1x12xf32, #tpu.memory_space<vmem>>, %arg6: memref<12x132xf32, #tpu.memory_space<vmem>>, %arg7: memref<8x132xf32, #tpu.memory_space<vmem>>, %arg8: memref<132x55xf32, #tpu.memory_space<vmem>>, %arg9: memref<8x8xf32, #tpu.memory_space<vmem>>, %arg10: memref<8x1xf32, #tpu.memory_space<vmem>>, %arg11: memref<8x1xf32, #tpu.memory_space<vmem>>, %arg12: memref<11x8x512xf32, #tpu.memory_space<vmem>>, %arg13: memref<8x512xf32, #tpu.memory_space<vmem>>, %arg14: memref<8x512xf32, #tpu.memory_space<vmem>>) attributes {dimension_semantics = [#tpu.dimension_semantics<arbitrary>], iteration_bounds = array<i64: 1>, scalar_prefetch = 0 : i64, scratch_operands = 1 : i64, tpu.core_type = #tpu.core_type<tc>, window_params = [{pipeline_mode = #tpu.pipeline_mode<synchronous>, transform_indices = @transform_0, window_bounds = array<i64: 8, 256>}, {pipeline_mode = #tpu.pipeline_mode<synchronous>, transform_indices = @transform_1, window_bounds = array<i64: 256, 128>}, {pipeline_mode = #tpu.pipeline_mode<synchronous>, transform_indices = @transform_2, window_bounds = array<i64: 1, 128>}, {pipeline_mode = #tpu.pipeline_mode<synchronous>, transform_indices = @transform_3, window_bounds = array<i64: 128, 12>}, {pipeline_mode = #tpu.pipeline_mode<synchronous>, transform_indices = @transform_4, window_bounds = array<i64: 1, 12>}, {pipeline_mode = #tpu.pipeline_mode<synchronous>, transform_indices = @transform_5, window_bounds = array<i64: 12, 132>}, {pipeline_mode = #tpu.pipeline_mode<synchronous>, transform_indices = @transform_6, window_bounds = array<i64: 8, 132>}, {pipeline_mode = #tpu.pipeline_mode<synchronous>, transform_indices = @transform_7, window_bounds = array<i64: 132, 55>}, {pipeline_mode = #tpu.pipeline_mode<synchronous>, transform_indices = @transform_8, window_bounds = array<i64: 8, 8>}, {pipeline_mode = #tpu.pipeline_mode<synchronous>, transform_indices = @transform_9, window_bounds = array<i64: 8, 1>}, {pipeline_mode = #tpu.pipeline_mode<synchronous>, transform_indices = @transform_10, window_bounds = array<i64: 8, 1>}, {pipeline_mode = #tpu.pipeline_mode<synchronous>, transform_indices = @transform_11, window_bounds = array<i64: 11, 8, 512>}, {pipeline_mode = #tpu.pipeline_mode<synchronous>, transform_indices = @transform_12, window_bounds = array<i64: 8, 512>}]} {
    %c0 = arith.constant 0 : index
    %c0_0 = arith.constant 0 : index
    %0 = vector.load %arg1[%c0, %c0_0] : memref<8x256xf32, #tpu.memory_space<vmem>>, vector<8x256xf32>
    %c0_1 = arith.constant 0 : index
    %c0_2 = arith.constant 0 : index
    %1 = vector.load %arg2[%c0_1, %c0_2] : memref<256x128xf32, #tpu.memory_space<vmem>>, vector<256x128xf32>
    %cst = arith.constant dense<0.000000e+00> : vector<8x128xf32>
    %2 = tpu.matmul %0, %1, %cst {dimension_numbers = #tpu.dot_dimension_numbers<[1], [0], [0], [1], [0, 0, 1, 1], [], []>} : vector<8x256xf32>, vector<256x128xf32>, vector<8x128xf32> -> vector<8x128xf32>
    %c0_3 = arith.constant 0 : index
    %c0_4 = arith.constant 0 : index
    %3 = vector.load %arg3[%c0_3, %c0_4] : memref<1x128xf32, #tpu.memory_space<vmem>>, vector<1x128xf32>
    %4 = vector.broadcast %3 : vector<1x128xf32> to vector<8x128xf32>
    %5 = arith.addf %2, %4 : vector<8x128xf32>
    %cst_5 = arith.constant 0.000000e+00 : f32
    %6 = vector.broadcast %cst_5 : f32 to vector<8x128xf32>
    %7 = arith.maximumf %5, %6 : vector<8x128xf32>
    %c0_6 = arith.constant 0 : index
    %c0_7 = arith.constant 0 : index
    %8 = vector.load %arg4[%c0_6, %c0_7] : memref<128x12xf32, #tpu.memory_space<vmem>>, vector<128x12xf32>
    %cst_8 = arith.constant dense<0.000000e+00> : vector<8x12xf32>
    %9 = tpu.matmul %7, %8, %cst_8 {dimension_numbers = #tpu.dot_dimension_numbers<[1], [0], [0], [1], [0, 0, 1, 1], [], []>} : vector<8x128xf32>, vector<128x12xf32>, vector<8x12xf32> -> vector<8x12xf32>
    %c0_9 = arith.constant 0 : index
    %c0_10 = arith.constant 0 : index
    %10 = vector.load %arg5[%c0_9, %c0_10] : memref<1x12xf32, #tpu.memory_space<vmem>>, vector<1x12xf32>
    %11 = vector.broadcast %10 : vector<1x12xf32> to vector<8x12xf32>
    %12 = arith.addf %9, %11 : vector<8x12xf32>
    %cst_11 = arith.constant dense<0xFF800000> : vector<8xf32>
    %13 = vector.multi_reduction <maximumf>, %12, %cst_11 [1] : vector<8x12xf32> to vector<8xf32>
    %14 = vector.shape_cast %13 : vector<8xf32> to vector<8x1xf32>
    %15 = vector.broadcast %14 : vector<8x1xf32> to vector<8x12xf32>
    %16 = arith.subf %12, %15 : vector<8x12xf32>
    %17 = math.exp %16 : vector<8x12xf32>
    %cst_12 = arith.constant dense<0.000000e+00> : vector<8xf32>
    %18 = vector.multi_reduction <add>, %17, %cst_12 [1] : vector<8x12xf32> to vector<8xf32>
    %19 = vector.shape_cast %18 : vector<8xf32> to vector<8x1xf32>
    %20 = tpu.reciprocal %19 {approx = true} : vector<8x1xf32> -> vector<8x1xf32>
    %21 = vector.broadcast %20 : vector<8x1xf32> to vector<8x12xf32>
    %22 = arith.mulf %17, %21 : vector<8x12xf32>
    %c0_13 = arith.constant 0 : index
    %c0_14 = arith.constant 0 : index
    %23 = vector.load %arg6[%c0_13, %c0_14] : memref<12x132xf32, #tpu.memory_space<vmem>>, vector<12x132xf32>
    %cst_15 = arith.constant dense<0.000000e+00> : vector<8x132xf32>
    %24 = tpu.matmul %22, %23, %cst_15 {dimension_numbers = #tpu.dot_dimension_numbers<[1], [0], [0], [1], [0, 0, 1, 1], [], []>} : vector<8x12xf32>, vector<12x132xf32>, vector<8x132xf32> -> vector<8x132xf32>
    %c0_16 = arith.constant 0 : index
    %c0_17 = arith.constant 0 : index
    %25 = vector.load %arg7[%c0_16, %c0_17] : memref<8x132xf32, #tpu.memory_space<vmem>>, vector<8x132xf32>
    %26 = arith.mulf %25, %24 : vector<8x132xf32>
    %c0_18 = arith.constant 0 : index
    %c0_19 = arith.constant 0 : index
    %27 = vector.load %arg8[%c0_18, %c0_19] : memref<132x55xf32, #tpu.memory_space<vmem>>, vector<132x55xf32>
    %cst_20 = arith.constant dense<0.000000e+00> : vector<8x55xf32>
    %28 = tpu.matmul %26, %27, %cst_20 {dimension_numbers = #tpu.dot_dimension_numbers<[1], [0], [0], [1], [0, 0, 1, 1], [], []>} : vector<8x132xf32>, vector<132x55xf32>, vector<8x55xf32> -> vector<8x55xf32>
    %cst_21 = arith.constant 0.000000e+00 : f32
    %29 = vector.broadcast %cst_21 : f32 to vector<8x512xf32>
    %c0_22 = arith.constant 0 : index
    %c0_23 = arith.constant 0 : index
    %c0_24 = arith.constant 0 : index
    %30 = vector.load %arg12[%c0_22, %c0_23, %c0_24] : memref<11x8x512xf32, #tpu.memory_space<vmem>>, vector<1x8x512xf32>
    %31 = vector.shape_cast %30 : vector<1x8x512xf32> to vector<8x512xf32>
    %32 = vector.extract_strided_slice %28 {offsets = [0, 44], sizes = [8, 1], strides = [1, 1]} : vector<8x55xf32> to vector<8x1xf32>
    %33 = vector.broadcast %32 : vector<8x1xf32> to vector<8x512xf32>
    %34 = arith.mulf %31, %33 : vector<8x512xf32>
    %35 = arith.addf %29, %34 : vector<8x512xf32>
    %c1 = arith.constant 1 : index
    %c0_25 = arith.constant 0 : index
    %c0_26 = arith.constant 0 : index
    %36 = vector.load %arg12[%c1, %c0_25, %c0_26] : memref<11x8x512xf32, #tpu.memory_space<vmem>>, vector<1x8x512xf32>
    %37 = vector.shape_cast %36 : vector<1x8x512xf32> to vector<8x512xf32>
    %38 = vector.extract_strided_slice %28 {offsets = [0, 45], sizes = [8, 1], strides = [1, 1]} : vector<8x55xf32> to vector<8x1xf32>
    %39 = vector.broadcast %38 : vector<8x1xf32> to vector<8x512xf32>
    %40 = arith.mulf %37, %39 : vector<8x512xf32>
    %41 = arith.addf %35, %40 : vector<8x512xf32>
    %c2 = arith.constant 2 : index
    %c0_27 = arith.constant 0 : index
    %c0_28 = arith.constant 0 : index
    %42 = vector.load %arg12[%c2, %c0_27, %c0_28] : memref<11x8x512xf32, #tpu.memory_space<vmem>>, vector<1x8x512xf32>
    %43 = vector.shape_cast %42 : vector<1x8x512xf32> to vector<8x512xf32>
    %44 = vector.extract_strided_slice %28 {offsets = [0, 46], sizes = [8, 1], strides = [1, 1]} : vector<8x55xf32> to vector<8x1xf32>
    %45 = vector.broadcast %44 : vector<8x1xf32> to vector<8x512xf32>
    %46 = arith.mulf %43, %45 : vector<8x512xf32>
    %47 = arith.addf %41, %46 : vector<8x512xf32>
    %c3 = arith.constant 3 : index
    %c0_29 = arith.constant 0 : index
    %c0_30 = arith.constant 0 : index
    %48 = vector.load %arg12[%c3, %c0_29, %c0_30] : memref<11x8x512xf32, #tpu.memory_space<vmem>>, vector<1x8x512xf32>
    %49 = vector.shape_cast %48 : vector<1x8x512xf32> to vector<8x512xf32>
    %50 = vector.extract_strided_slice %28 {offsets = [0, 47], sizes = [8, 1], strides = [1, 1]} : vector<8x55xf32> to vector<8x1xf32>
    %51 = vector.broadcast %50 : vector<8x1xf32> to vector<8x512xf32>
    %52 = arith.mulf %49, %51 : vector<8x512xf32>
    %53 = arith.addf %47, %52 : vector<8x512xf32>
    %c4 = arith.constant 4 : index
    %c0_31 = arith.constant 0 : index
    %c0_32 = arith.constant 0 : index
    %54 = vector.load %arg12[%c4, %c0_31, %c0_32] : memref<11x8x512xf32, #tpu.memory_space<vmem>>, vector<1x8x512xf32>
    %55 = vector.shape_cast %54 : vector<1x8x512xf32> to vector<8x512xf32>
    %56 = vector.extract_strided_slice %28 {offsets = [0, 48], sizes = [8, 1], strides = [1, 1]} : vector<8x55xf32> to vector<8x1xf32>
    %57 = vector.broadcast %56 : vector<8x1xf32> to vector<8x512xf32>
    %58 = arith.mulf %55, %57 : vector<8x512xf32>
    %59 = arith.addf %53, %58 : vector<8x512xf32>
    %c5 = arith.constant 5 : index
    %c0_33 = arith.constant 0 : index
    %c0_34 = arith.constant 0 : index
    %60 = vector.load %arg12[%c5, %c0_33, %c0_34] : memref<11x8x512xf32, #tpu.memory_space<vmem>>, vector<1x8x512xf32>
    %61 = vector.shape_cast %60 : vector<1x8x512xf32> to vector<8x512xf32>
    %62 = vector.extract_strided_slice %28 {offsets = [0, 49], sizes = [8, 1], strides = [1, 1]} : vector<8x55xf32> to vector<8x1xf32>
    %63 = vector.broadcast %62 : vector<8x1xf32> to vector<8x512xf32>
    %64 = arith.mulf %61, %63 : vector<8x512xf32>
    %65 = arith.addf %59, %64 : vector<8x512xf32>
    %c6 = arith.constant 6 : index
    %c0_35 = arith.constant 0 : index
    %c0_36 = arith.constant 0 : index
    %66 = vector.load %arg12[%c6, %c0_35, %c0_36] : memref<11x8x512xf32, #tpu.memory_space<vmem>>, vector<1x8x512xf32>
    %67 = vector.shape_cast %66 : vector<1x8x512xf32> to vector<8x512xf32>
    %68 = vector.extract_strided_slice %28 {offsets = [0, 50], sizes = [8, 1], strides = [1, 1]} : vector<8x55xf32> to vector<8x1xf32>
    %69 = vector.broadcast %68 : vector<8x1xf32> to vector<8x512xf32>
    %70 = arith.mulf %67, %69 : vector<8x512xf32>
    %71 = arith.addf %65, %70 : vector<8x512xf32>
    %c7 = arith.constant 7 : index
    %c0_37 = arith.constant 0 : index
    %c0_38 = arith.constant 0 : index
    %72 = vector.load %arg12[%c7, %c0_37, %c0_38] : memref<11x8x512xf32, #tpu.memory_space<vmem>>, vector<1x8x512xf32>
    %73 = vector.shape_cast %72 : vector<1x8x512xf32> to vector<8x512xf32>
    %74 = vector.extract_strided_slice %28 {offsets = [0, 51], sizes = [8, 1], strides = [1, 1]} : vector<8x55xf32> to vector<8x1xf32>
    %75 = vector.broadcast %74 : vector<8x1xf32> to vector<8x512xf32>
    %76 = arith.mulf %73, %75 : vector<8x512xf32>
    %77 = arith.addf %71, %76 : vector<8x512xf32>
    %c8 = arith.constant 8 : index
    %c0_39 = arith.constant 0 : index
    %c0_40 = arith.constant 0 : index
    %78 = vector.load %arg12[%c8, %c0_39, %c0_40] : memref<11x8x512xf32, #tpu.memory_space<vmem>>, vector<1x8x512xf32>
    %79 = vector.shape_cast %78 : vector<1x8x512xf32> to vector<8x512xf32>
    %80 = vector.extract_strided_slice %28 {offsets = [0, 52], sizes = [8, 1], strides = [1, 1]} : vector<8x55xf32> to vector<8x1xf32>
    %81 = vector.broadcast %80 : vector<8x1xf32> to vector<8x512xf32>
    %82 = arith.mulf %79, %81 : vector<8x512xf32>
    %83 = arith.addf %77, %82 : vector<8x512xf32>
    %c9 = arith.constant 9 : index
    %c0_41 = arith.constant 0 : index
    %c0_42 = arith.constant 0 : index
    %84 = vector.load %arg12[%c9, %c0_41, %c0_42] : memref<11x8x512xf32, #tpu.memory_space<vmem>>, vector<1x8x512xf32>
    %85 = vector.shape_cast %84 : vector<1x8x512xf32> to vector<8x512xf32>
    %86 = vector.extract_strided_slice %28 {offsets = [0, 53], sizes = [8, 1], strides = [1, 1]} : vector<8x55xf32> to vector<8x1xf32>
    %87 = vector.broadcast %86 : vector<8x1xf32> to vector<8x512xf32>
    %88 = arith.mulf %85, %87 : vector<8x512xf32>
    %89 = arith.addf %83, %88 : vector<8x512xf32>
    %c10 = arith.constant 10 : index
    %c0_43 = arith.constant 0 : index
    %c0_44 = arith.constant 0 : index
    %90 = vector.load %arg12[%c10, %c0_43, %c0_44] : memref<11x8x512xf32, #tpu.memory_space<vmem>>, vector<1x8x512xf32>
    %91 = vector.shape_cast %90 : vector<1x8x512xf32> to vector<8x512xf32>
    %92 = vector.extract_strided_slice %28 {offsets = [0, 54], sizes = [8, 1], strides = [1, 1]} : vector<8x55xf32> to vector<8x1xf32>
    %93 = vector.broadcast %92 : vector<8x1xf32> to vector<8x512xf32>
    %94 = arith.mulf %91, %93 : vector<8x512xf32>
    %95 = arith.addf %89, %94 : vector<8x512xf32>
    %c0_45 = arith.constant 0 : index
    %c0_46 = arith.constant 0 : index
    %96 = vector.load %arg14[%c0_45, %c0_46] : memref<8x512xf32, #tpu.memory_space<vmem>>, vector<8x512xf32>
    tpu.vector_store %arg14[%c0_45, %c0_46], %95 {strides = array<i32>} : memref<8x512xf32, #tpu.memory_space<vmem>>, vector<8x512xf32>,
    %97 = tpu.iota {dimensions = array<i32: 1>} : vector<8x6xi32>
    %cst_47 = arith.constant 0.000000e+00 : f32
    %98 = vector.broadcast %cst_47 : f32 to vector<8x6xf32>
    %cst_48 = arith.constant 0.000000e+00 : f32
    %99 = vector.broadcast %cst_48 : f32 to vector<8x6xf32>
    %c0_49 = arith.constant 0 : index
    %c0_50 = arith.constant 0 : index
    %c502 = arith.constant 502 : index
    %100 = vector.load %arg12[%c0_49, %c0_50, %c502] : memref<11x8x512xf32, #tpu.memory_space<vmem>>, vector<1x8x6xf32>
    %101 = vector.shape_cast %100 : vector<1x8x6xf32> to vector<8x6xf32>
    %102 = vector.extract_strided_slice %28 {offsets = [0, 0], sizes = [8, 1], strides = [1, 1]} : vector<8x55xf32> to vector<8x1xf32>
    %103 = vector.broadcast %102 : vector<8x1xf32> to vector<8x6xf32>
    %104 = arith.mulf %101, %103 : vector<8x6xf32>
    %105 = arith.addf %99, %104 : vector<8x6xf32>
    %c1_51 = arith.constant 1 : index
    %c0_52 = arith.constant 0 : index
    %c502_53 = arith.constant 502 : index
    %106 = vector.load %arg12[%c1_51, %c0_52, %c502_53] : memref<11x8x512xf32, #tpu.memory_space<vmem>>, vector<1x8x6xf32>
    %107 = vector.shape_cast %106 : vector<1x8x6xf32> to vector<8x6xf32>
    %108 = vector.extract_strided_slice %28 {offsets = [0, 1], sizes = [8, 1], strides = [1, 1]} : vector<8x55xf32> to vector<8x1xf32>
    %109 = vector.broadcast %108 : vector<8x1xf32> to vector<8x6xf32>
    %110 = arith.mulf %107, %109 : vector<8x6xf32>
    %111 = arith.addf %105, %110 : vector<8x6xf32>
    %c2_54 = arith.constant 2 : index
    %c0_55 = arith.constant 0 : index
    %c502_56 = arith.constant 502 : index
    %112 = vector.load %arg12[%c2_54, %c0_55, %c502_56] : memref<11x8x512xf32, #tpu.memory_space<vmem>>, vector<1x8x6xf32>
    %113 = vector.shape_cast %112 : vector<1x8x6xf32> to vector<8x6xf32>
    %114 = vector.extract_strided_slice %28 {offsets = [0, 2], sizes = [8, 1], strides = [1, 1]} : vector<8x55xf32> to vector<8x1xf32>
    %115 = vector.broadcast %114 : vector<8x1xf32> to vector<8x6xf32>
    %116 = arith.mulf %113, %115 : vector<8x6xf32>
    %117 = arith.addf %111, %116 : vector<8x6xf32>
    %c3_57 = arith.constant 3 : index
    %c0_58 = arith.constant 0 : index
    %c502_59 = arith.constant 502 : index
    %118 = vector.load %arg12[%c3_57, %c0_58, %c502_59] : memref<11x8x512xf32, #tpu.memory_space<vmem>>, vector<1x8x6xf32>
    %119 = vector.shape_cast %118 : vector<1x8x6xf32> to vector<8x6xf32>
    %120 = vector.extract_strided_slice %28 {offsets = [0, 3], sizes = [8, 1], strides = [1, 1]} : vector<8x55xf32> to vector<8x1xf32>
    %121 = vector.broadcast %120 : vector<8x1xf32> to vector<8x6xf32>
    %122 = arith.mulf %119, %121 : vector<8x6xf32>
    %123 = arith.addf %117, %122 : vector<8x6xf32>
    %c4_60 = arith.constant 4 : index
    %c0_61 = arith.constant 0 : index
    %c502_62 = arith.constant 502 : index
    %124 = vector.load %arg12[%c4_60, %c0_61, %c502_62] : memref<11x8x512xf32, #tpu.memory_space<vmem>>, vector<1x8x6xf32>
    %125 = vector.shape_cast %124 : vector<1x8x6xf32> to vector<8x6xf32>
    %126 = vector.extract_strided_slice %28 {offsets = [0, 4], sizes = [8, 1], strides = [1, 1]} : vector<8x55xf32> to vector<8x1xf32>
    %127 = vector.broadcast %126 : vector<8x1xf32> to vector<8x6xf32>
    %128 = arith.mulf %125, %127 : vector<8x6xf32>
    %129 = arith.addf %123, %128 : vector<8x6xf32>
    %c6_i32 = arith.constant 6 : i32
    %130 = vector.broadcast %c6_i32 : i32 to vector<8x6xi32>
    %131 = arith.cmpi slt, %97, %130 : vector<8x6xi32>
    %cst_63 = arith.constant 0.000000e+00 : f32
    %132 = vector.broadcast %cst_63 : f32 to vector<8x6xf32>
    %133 = arith.select %131, %129, %132 : vector<8x6xi1>, vector<8x6xf32>
    %134 = arith.addf %98, %133 : vector<8x6xf32>
    %cst_64 = arith.constant 0.000000e+00 : f32
    %135 = vector.broadcast %cst_64 : f32 to vector<8x6xf32>
    %c0_65 = arith.constant 0 : index
    %c0_66 = arith.constant 0 : index
    %c502_67 = arith.constant 502 : index
    %136 = vector.load %arg12[%c0_65, %c0_66, %c502_67] : memref<11x8x512xf32, #tpu.memory_space<vmem>>, vector<1x8x6xf32>
    %137 = vector.shape_cast %136 : vector<1x8x6xf32> to vector<8x6xf32>
    %138 = vector.extract_strided_slice %28 {offsets = [0, 11], sizes = [8, 1], strides = [1, 1]} : vector<8x55xf32> to vector<8x1xf32>
    %139 = vector.broadcast %138 : vector<8x1xf32> to vector<8x6xf32>
    %140 = arith.mulf %137, %139 : vector<8x6xf32>
    %141 = arith.addf %135, %140 : vector<8x6xf32>
    %c1_68 = arith.constant 1 : index
    %c0_69 = arith.constant 0 : index
    %c502_70 = arith.constant 502 : index
    %142 = vector.load %arg12[%c1_68, %c0_69, %c502_70] : memref<11x8x512xf32, #tpu.memory_space<vmem>>, vector<1x8x6xf32>
    %143 = vector.shape_cast %142 : vector<1x8x6xf32> to vector<8x6xf32>
    %144 = vector.extract_strided_slice %28 {offsets = [0, 12], sizes = [8, 1], strides = [1, 1]} : vector<8x55xf32> to vector<8x1xf32>
    %145 = vector.broadcast %144 : vector<8x1xf32> to vector<8x6xf32>
    %146 = arith.mulf %143, %145 : vector<8x6xf32>
    %147 = arith.addf %141, %146 : vector<8x6xf32>
    %c2_71 = arith.constant 2 : index
    %c0_72 = arith.constant 0 : index
    %c502_73 = arith.constant 502 : index
    %148 = vector.load %arg12[%c2_71, %c0_72, %c502_73] : memref<11x8x512xf32, #tpu.memory_space<vmem>>, vector<1x8x6xf32>
    %149 = vector.shape_cast %148 : vector<1x8x6xf32> to vector<8x6xf32>
    %150 = vector.extract_strided_slice %28 {offsets = [0, 13], sizes = [8, 1], strides = [1, 1]} : vector<8x55xf32> to vector<8x1xf32>
    %151 = vector.broadcast %150 : vector<8x1xf32> to vector<8x6xf32>
    %152 = arith.mulf %149, %151 : vector<8x6xf32>
    %153 = arith.addf %147, %152 : vector<8x6xf32>
    %c3_74 = arith.constant 3 : index
    %c0_75 = arith.constant 0 : index
    %c502_76 = arith.constant 502 : index
    %154 = vector.load %arg12[%c3_74, %c0_75, %c502_76] : memref<11x8x512xf32, #tpu.memory_space<vmem>>, vector<1x8x6xf32>
    %155 = vector.shape_cast %154 : vector<1x8x6xf32> to vector<8x6xf32>
    %156 = vector.extract_strided_slice %28 {offsets = [0, 14], sizes = [8, 1], strides = [1, 1]} : vector<8x55xf32> to vector<8x1xf32>
    %157 = vector.broadcast %156 : vector<8x1xf32> to vector<8x6xf32>
    %158 = arith.mulf %155, %157 : vector<8x6xf32>
    %159 = arith.addf %153, %158 : vector<8x6xf32>
    %c4_77 = arith.constant 4 : index
    %c0_78 = arith.constant 0 : index
    %c502_79 = arith.constant 502 : index
    %160 = vector.load %arg12[%c4_77, %c0_78, %c502_79] : memref<11x8x512xf32, #tpu.memory_space<vmem>>, vector<1x8x6xf32>
    %161 = vector.shape_cast %160 : vector<1x8x6xf32> to vector<8x6xf32>
    %162 = vector.extract_strided_slice %28 {offsets = [0, 15], sizes = [8, 1], strides = [1, 1]} : vector<8x55xf32> to vector<8x1xf32>
    %163 = vector.broadcast %162 : vector<8x1xf32> to vector<8x6xf32>
    %164 = arith.mulf %161, %163 : vector<8x6xf32>
    %165 = arith.addf %159, %164 : vector<8x6xf32>
    %c5_80 = arith.constant 5 : index
    %c0_81 = arith.constant 0 : index
    %c502_82 = arith.constant 502 : index
    %166 = vector.load %arg12[%c5_80, %c0_81, %c502_82] : memref<11x8x512xf32, #tpu.memory_space<vmem>>, vector<1x8x6xf32>
    %167 = vector.shape_cast %166 : vector<1x8x6xf32> to vector<8x6xf32>
    %168 = vector.extract_strided_slice %28 {offsets = [0, 16], sizes = [8, 1], strides = [1, 1]} : vector<8x55xf32> to vector<8x1xf32>
    %169 = vector.broadcast %168 : vector<8x1xf32> to vector<8x6xf32>
    %170 = arith.mulf %167, %169 : vector<8x6xf32>
    %171 = arith.addf %165, %170 : vector<8x6xf32>
    %c6_83 = arith.constant 6 : index
    %c0_84 = arith.constant 0 : index
    %c502_85 = arith.constant 502 : index
    %172 = vector.load %arg12[%c6_83, %c0_84, %c502_85] : memref<11x8x512xf32, #tpu.memory_space<vmem>>, vector<1x8x6xf32>
    %173 = vector.shape_cast %172 : vector<1x8x6xf32> to vector<8x6xf32>
    %174 = vector.extract_strided_slice %28 {offsets = [0, 17], sizes = [8, 1], strides = [1, 1]} : vector<8x55xf32> to vector<8x1xf32>
    %175 = vector.broadcast %174 : vector<8x1xf32> to vector<8x6xf32>
    %176 = arith.mulf %173, %175 : vector<8x6xf32>
    %177 = arith.addf %171, %176 : vector<8x6xf32>
    %c4_i32 = arith.constant 4 : i32
    %178 = vector.broadcast %c4_i32 : i32 to vector<8x6xi32>
    %179 = arith.cmpi slt, %97, %178 : vector<8x6xi32>
    %cst_86 = arith.constant 0.000000e+00 : f32
    %180 = vector.broadcast %cst_86 : f32 to vector<8x6xf32>
    %181 = arith.select %179, %177, %180 : vector<8x6xi1>, vector<8x6xf32>
    %182 = arith.addf %134, %181 : vector<8x6xf32>
    %cst_87 = arith.constant 0.000000e+00 : f32
    %183 = vector.broadcast %cst_87 : f32 to vector<8x6xf32>
    %c0_88 = arith.constant 0 : index
    %c0_89 = arith.constant 0 : index
    %c502_90 = arith.constant 502 : index
    %184 = vector.load %arg12[%c0_88, %c0_89, %c502_90] : memref<11x8x512xf32, #tpu.memory_space<vmem>>, vector<1x8x6xf32>
    %185 = vector.shape_cast %184 : vector<1x8x6xf32> to vector<8x6xf32>
    %186 = vector.extract_strided_slice %28 {offsets = [0, 22], sizes = [8, 1], strides = [1, 1]} : vector<8x55xf32> to vector<8x1xf32>
    %187 = vector.broadcast %186 : vector<8x1xf32> to vector<8x6xf32>
    %188 = arith.mulf %185, %187 : vector<8x6xf32>
    %189 = arith.addf %183, %188 : vector<8x6xf32>
    %c1_91 = arith.constant 1 : index
    %c0_92 = arith.constant 0 : index
    %c502_93 = arith.constant 502 : index
    %190 = vector.load %arg12[%c1_91, %c0_92, %c502_93] : memref<11x8x512xf32, #tpu.memory_space<vmem>>, vector<1x8x6xf32>
    %191 = vector.shape_cast %190 : vector<1x8x6xf32> to vector<8x6xf32>
    %192 = vector.extract_strided_slice %28 {offsets = [0, 23], sizes = [8, 1], strides = [1, 1]} : vector<8x55xf32> to vector<8x1xf32>
    %193 = vector.broadcast %192 : vector<8x1xf32> to vector<8x6xf32>
    %194 = arith.mulf %191, %193 : vector<8x6xf32>
    %195 = arith.addf %189, %194 : vector<8x6xf32>
    %c2_94 = arith.constant 2 : index
    %c0_95 = arith.constant 0 : index
    %c502_96 = arith.constant 502 : index
    %196 = vector.load %arg12[%c2_94, %c0_95, %c502_96] : memref<11x8x512xf32, #tpu.memory_space<vmem>>, vector<1x8x6xf32>
    %197 = vector.shape_cast %196 : vector<1x8x6xf32> to vector<8x6xf32>
    %198 = vector.extract_strided_slice %28 {offsets = [0, 24], sizes = [8, 1], strides = [1, 1]} : vector<8x55xf32> to vector<8x1xf32>
    %199 = vector.broadcast %198 : vector<8x1xf32> to vector<8x6xf32>
    %200 = arith.mulf %197, %199 : vector<8x6xf32>
    %201 = arith.addf %195, %200 : vector<8x6xf32>
    %c3_97 = arith.constant 3 : index
    %c0_98 = arith.constant 0 : index
    %c502_99 = arith.constant 502 : index
    %202 = vector.load %arg12[%c3_97, %c0_98, %c502_99] : memref<11x8x512xf32, #tpu.memory_space<vmem>>, vector<1x8x6xf32>
    %203 = vector.shape_cast %202 : vector<1x8x6xf32> to vector<8x6xf32>
    %204 = vector.extract_strided_slice %28 {offsets = [0, 25], sizes = [8, 1], strides = [1, 1]} : vector<8x55xf32> to vector<8x1xf32>
    %205 = vector.broadcast %204 : vector<8x1xf32> to vector<8x6xf32>
    %206 = arith.mulf %203, %205 : vector<8x6xf32>
    %207 = arith.addf %201, %206 : vector<8x6xf32>
    %c4_100 = arith.constant 4 : index
    %c0_101 = arith.constant 0 : index
    %c502_102 = arith.constant 502 : index
    %208 = vector.load %arg12[%c4_100, %c0_101, %c502_102] : memref<11x8x512xf32, #tpu.memory_space<vmem>>, vector<1x8x6xf32>
    %209 = vector.shape_cast %208 : vector<1x8x6xf32> to vector<8x6xf32>
    %210 = vector.extract_strided_slice %28 {offsets = [0, 26], sizes = [8, 1], strides = [1, 1]} : vector<8x55xf32> to vector<8x1xf32>
    %211 = vector.broadcast %210 : vector<8x1xf32> to vector<8x6xf32>
    %212 = arith.mulf %209, %211 : vector<8x6xf32>
    %213 = arith.addf %207, %212 : vector<8x6xf32>
    %c5_103 = arith.constant 5 : index
    %c0_104 = arith.constant 0 : index
    %c502_105 = arith.constant 502 : index
    %214 = vector.load %arg12[%c5_103, %c0_104, %c502_105] : memref<11x8x512xf32, #tpu.memory_space<vmem>>, vector<1x8x6xf32>
    %215 = vector.shape_cast %214 : vector<1x8x6xf32> to vector<8x6xf32>
    %216 = vector.extract_strided_slice %28 {offsets = [0, 27], sizes = [8, 1], strides = [1, 1]} : vector<8x55xf32> to vector<8x1xf32>
    %217 = vector.broadcast %216 : vector<8x1xf32> to vector<8x6xf32>
    %218 = arith.mulf %215, %217 : vector<8x6xf32>
    %219 = arith.addf %213, %218 : vector<8x6xf32>
    %c6_106 = arith.constant 6 : index
    %c0_107 = arith.constant 0 : index
    %c502_108 = arith.constant 502 : index
    %220 = vector.load %arg12[%c6_106, %c0_107, %c502_108] : memref<11x8x512xf32, #tpu.memory_space<vmem>>, vector<1x8x6xf32>
    %221 = vector.shape_cast %220 : vector<1x8x6xf32> to vector<8x6xf32>
    %222 = vector.extract_strided_slice %28 {offsets = [0, 28], sizes = [8, 1], strides = [1, 1]} : vector<8x55xf32> to vector<8x1xf32>
    %223 = vector.broadcast %222 : vector<8x1xf32> to vector<8x6xf32>
    %224 = arith.mulf %221, %223 : vector<8x6xf32>
    %225 = arith.addf %219, %224 : vector<8x6xf32>
    %c7_109 = arith.constant 7 : index
    %c0_110 = arith.constant 0 : index
    %c502_111 = arith.constant 502 : index
    %226 = vector.load %arg12[%c7_109, %c0_110, %c502_111] : memref<11x8x512xf32, #tpu.memory_space<vmem>>, vector<1x8x6xf32>
    %227 = vector.shape_cast %226 : vector<1x8x6xf32> to vector<8x6xf32>
    %228 = vector.extract_strided_slice %28 {offsets = [0, 29], sizes = [8, 1], strides = [1, 1]} : vector<8x55xf32> to vector<8x1xf32>
    %229 = vector.broadcast %228 : vector<8x1xf32> to vector<8x6xf32>
    %230 = arith.mulf %227, %229 : vector<8x6xf32>
    %231 = arith.addf %225, %230 : vector<8x6xf32>
    %c8_112 = arith.constant 8 : index
    %c0_113 = arith.constant 0 : index
    %c502_114 = arith.constant 502 : index
    %232 = vector.load %arg12[%c8_112, %c0_113, %c502_114] : memref<11x8x512xf32, #tpu.memory_space<vmem>>, vector<1x8x6xf32>
    %233 = vector.shape_cast %232 : vector<1x8x6xf32> to vector<8x6xf32>
    %234 = vector.extract_strided_slice %28 {offsets = [0, 30], sizes = [8, 1], strides = [1, 1]} : vector<8x55xf32> to vector<8x1xf32>
    %235 = vector.broadcast %234 : vector<8x1xf32> to vector<8x6xf32>
    %236 = arith.mulf %233, %235 : vector<8x6xf32>
    %237 = arith.addf %231, %236 : vector<8x6xf32>
    %c2_i32 = arith.constant 2 : i32
    %238 = vector.broadcast %c2_i32 : i32 to vector<8x6xi32>
    %239 = arith.cmpi slt, %97, %238 : vector<8x6xi32>
    %cst_115 = arith.constant 0.000000e+00 : f32
    %240 = vector.broadcast %cst_115 : f32 to vector<8x6xf32>
    %241 = arith.select %239, %237, %240 : vector<8x6xi1>, vector<8x6xf32>
    %242 = arith.addf %182, %241 : vector<8x6xf32>
    %c0_116 = arith.constant 0 : index
    %c502_117 = arith.constant 502 : index
    %243 = vector.load %arg14[%c0_116, %c502_117] : memref<8x512xf32, #tpu.memory_space<vmem>>, vector<8x6xf32>
    tpu.vector_store %arg14[%c0_116, %c502_117], %242 {strides = array<i32>} : memref<8x512xf32, #tpu.memory_space<vmem>>, vector<8x6xf32>,
    %c0_118 = arith.constant 0 : index
    %c0_119 = arith.constant 0 : index
    %244 = vector.load %arg14[%c0_118, %c0_119] : memref<8x512xf32, #tpu.memory_space<vmem>>, vector<8x512xf32>
    %245 = tpu.iota {dimensions = array<i32: 1>} : vector<8x512xi32>
    %c508_i32 = arith.constant 508 : i32
    %246 = vector.broadcast %c508_i32 : i32 to vector<8x512xi32>
    %247 = arith.cmpi slt, %245, %246 : vector<8x512xi32>
    %cst_120 = arith.constant 0.000000e+00 : f32
    %248 = vector.broadcast %cst_120 : f32 to vector<8x512xf32>
    %249 = arith.select %247, %244, %248 : vector<8x512xi1>, vector<8x512xf32>
    %c0_121 = arith.constant 0 : index
    %c0_122 = arith.constant 0 : index
    %250 = vector.load %arg9[%c0_121, %c0_122] : memref<8x8xf32, #tpu.memory_space<vmem>>, vector<8x8xf32>
    %cst_123 = arith.constant dense<0.000000e+00> : vector<8x512xf32>
    %251 = tpu.matmul %250, %249, %cst_123 {dimension_numbers = #tpu.dot_dimension_numbers<[1], [0], [0], [1], [0, 0, 1, 1], [], []>} : vector<8x8xf32>, vector<8x512xf32>, vector<8x512xf32> -> vector<8x512xf32>
    %c0_124 = arith.constant 0 : index
    %c0_125 = arith.constant 0 : index
    %252 = vector.load %arg9[%c0_124, %c0_125] : memref<8x8xf32, #tpu.memory_space<vmem>>, vector<8x8xf32>
    %253 = arith.mulf %249, %249 : vector<8x512xf32>
    %cst_126 = arith.constant dense<0.000000e+00> : vector<8x512xf32>
    %254 = tpu.matmul %252, %253, %cst_126 {dimension_numbers = #tpu.dot_dimension_numbers<[1], [0], [0], [1], [0, 0, 1, 1], [], []>} : vector<8x8xf32>, vector<8x512xf32>, vector<8x512xf32> -> vector<8x512xf32>
    %cst_127 = arith.constant dense<0.000000e+00> : vector<8xf32>
    %255 = vector.multi_reduction <add>, %251, %cst_127 [1] : vector<8x512xf32> to vector<8xf32>
    %256 = vector.shape_cast %255 : vector<8xf32> to vector<8x1xf32>
    %cst_128 = arith.constant 9.842520e-04 : f32
    %257 = vector.broadcast %cst_128 : f32 to vector<8x1xf32>
    %258 = arith.mulf %256, %257 : vector<8x1xf32>
    %cst_129 = arith.constant dense<0.000000e+00> : vector<8xf32>
    %259 = vector.multi_reduction <add>, %254, %cst_129 [1] : vector<8x512xf32> to vector<8xf32>
    %260 = vector.shape_cast %259 : vector<8xf32> to vector<8x1xf32>
    %cst_130 = arith.constant 9.842520e-04 : f32
    %261 = vector.broadcast %cst_130 : f32 to vector<8x1xf32>
    %262 = arith.mulf %260, %261 : vector<8x1xf32>
    %263 = arith.mulf %258, %258 : vector<8x1xf32>
    %264 = arith.subf %262, %263 : vector<8x1xf32>
    %cst_131 = arith.constant 9.99999974E-6 : f32
    %265 = vector.broadcast %cst_131 : f32 to vector<8x1xf32>
    %266 = arith.addf %264, %265 : vector<8x1xf32>
    %267 = math.rsqrt %266 : vector<8x1xf32>
    %268 = vector.broadcast %258 : vector<8x1xf32> to vector<8x512xf32>
    %269 = arith.subf %244, %268 : vector<8x512xf32>
    %270 = vector.broadcast %267 : vector<8x1xf32> to vector<8x512xf32>
    %271 = arith.mulf %269, %270 : vector<8x512xf32>
    %c0_132 = arith.constant 0 : index
    %c0_133 = arith.constant 0 : index
    %272 = vector.load %arg10[%c0_132, %c0_133] : memref<8x1xf32, #tpu.memory_space<vmem>>, vector<8x1xf32>
    %273 = vector.broadcast %272 : vector<8x1xf32> to vector<8x512xf32>
    %274 = arith.mulf %271, %273 : vector<8x512xf32>
    %c0_134 = arith.constant 0 : index
    %c0_135 = arith.constant 0 : index
    %275 = vector.load %arg11[%c0_134, %c0_135] : memref<8x1xf32, #tpu.memory_space<vmem>>, vector<8x1xf32>
    %276 = vector.broadcast %275 : vector<8x1xf32> to vector<8x512xf32>
    %277 = arith.addf %274, %276 : vector<8x512xf32>
    %cst_136 = arith.constant 0.000000e+00 : f32
    %278 = vector.broadcast %cst_136 : f32 to vector<8x512xf32>
    %279 = arith.maximumf %277, %278 : vector<8x512xf32>
    %c0_137 = arith.constant 0 : index
    %c0_138 = arith.constant 0 : index
    %280 = vector.load %arg13[%c0_137, %c0_138] : memref<8x512xf32, #tpu.memory_space<vmem>>, vector<8x512xf32>
    tpu.vector_store %arg13[%c0_137, %c0_138], %279 {strides = array<i32>} : memref<8x512xf32, #tpu.memory_space<vmem>>, vector<8x512xf32>,
    return
  }
  func.func @transform_0(%arg0: i32) -> (i32, i32) {
    %c0_i32 = arith.constant 0 : i32
    %c0_i32_0 = arith.constant 0 : i32
    %c0_i32_1 = arith.constant 0 : i32
    return %c0_i32, %c0_i32_0 : i32, i32
  }
  func.func @transform_1(%arg0: i32) -> (i32, i32) {
    %c0_i32 = arith.constant 0 : i32
    %c0_i32_0 = arith.constant 0 : i32
    %c0_i32_1 = arith.constant 0 : i32
    return %c0_i32, %c0_i32_0 : i32, i32
  }
  func.func @transform_2(%arg0: i32) -> (i32, i32) {
    %c0_i32 = arith.constant 0 : i32
    %c0_i32_0 = arith.constant 0 : i32
    %c0_i32_1 = arith.constant 0 : i32
    return %c0_i32, %c0_i32_0 : i32, i32
  }
  func.func @transform_3(%arg0: i32) -> (i32, i32) {
    %c0_i32 = arith.constant 0 : i32
    %c0_i32_0 = arith.constant 0 : i32
    %c0_i32_1 = arith.constant 0 : i32
    return %c0_i32, %c0_i32_0 : i32, i32
  }
  func.func @transform_4(%arg0: i32) -> (i32, i32) {
    %c0_i32 = arith.constant 0 : i32
    %c0_i32_0 = arith.constant 0 : i32
    %c0_i32_1 = arith.constant 0 : i32
    return %c0_i32, %c0_i32_0 : i32, i32
  }
  func.func @transform_5(%arg0: i32) -> (i32, i32) {
    %c0_i32 = arith.constant 0 : i32
    %c0_i32_0 = arith.constant 0 : i32
    %c0_i32_1 = arith.constant 0 : i32
    return %c0_i32, %c0_i32_0 : i32, i32
  }
  func.func @transform_6(%arg0: i32) -> (i32, i32) {
    %c0_i32 = arith.constant 0 : i32
    %c0_i32_0 = arith.constant 0 : i32
    %c0_i32_1 = arith.constant 0 : i32
    return %c0_i32, %c0_i32_0 : i32, i32
  }
  func.func @transform_7(%arg0: i32) -> (i32, i32) {
    %c0_i32 = arith.constant 0 : i32
    %c0_i32_0 = arith.constant 0 : i32
    %c0_i32_1 = arith.constant 0 : i32
    return %c0_i32, %c0_i32_0 : i32, i32
  }
  func.func @transform_8(%arg0: i32) -> (i32, i32) {
    %c0_i32 = arith.constant 0 : i32
    %c0_i32_0 = arith.constant 0 : i32
    %c0_i32_1 = arith.constant 0 : i32
    return %c0_i32, %c0_i32_0 : i32, i32
  }
  func.func @transform_9(%arg0: i32) -> (i32, i32) {
    %c0_i32 = arith.constant 0 : i32
    %c0_i32_0 = arith.constant 0 : i32
    %c0_i32_1 = arith.constant 0 : i32
    return %c0_i32, %c0_i32_0 : i32, i32
  }
  func.func @transform_10(%arg0: i32) -> (i32, i32) {
    %c0_i32 = arith.constant 0 : i32
    %c0_i32_0 = arith.constant 0 : i32
    %c0_i32_1 = arith.constant 0 : i32
    return %c0_i32, %c0_i32_0 : i32, i32
  }
  func.func @transform_11(%arg0: i32) -> (i32, i32, i32) {
    %c0_i32 = arith.constant 0 : i32
    %c0_i32_0 = arith.constant 0 : i32
    %c0_i32_1 = arith.constant 0 : i32
    %c0_i32_2 = arith.constant 0 : i32
    return %c0_i32, %c0_i32_0, %c0_i32_1 : i32, i32, i32
  }
  func.func @transform_12(%arg0: i32) -> (i32, i32) {
    %c0_i32 = arith.constant 0 : i32
    %c0_i32_0 = arith.constant 0 : i32
    %c0_i32_1 = arith.constant 0 : i32
    return %c0_i32, %c0_i32_0 : i32, i32
  }
}

</mosaic_0001>

<bundles_post_ra>
// kernel: tpu_custom_call.1
= control target key start
LH: loop header
LB: loop body
LE: loop exit
PB: predicated region body
PF: predicated region fallthrough
CT: control target
= control target key end

     0   :  { %17 = vsyncpa [#allocation4], 0  ;;  %s1668_s0 = inlined_call_operand.vmem [shape: f32[8,256], index: 0, kind: input, shape index: {}]   ;;  %s1669_s1 = inlined_call_operand.hbm [shape: f32[256,128], index: 1, kind: input, shape index: {}]   ;;  %s1670_s2 = inlined_call_operand.vmem [shape: f32[1,128], index: 2, kind: input, shape index: {}]   ;;  %s1671_s3 = inlined_call_operand.vmem [shape: f32[128,12], index: 3, kind: input, shape index: {}]   ;;  %s1672_s4 = inlined_call_operand.vmem [shape: f32[1,12], index: 4, kind: input, shape index: {}]   ;;  %s1673_s5 = inlined_call_operand.vmem [shape: f32[12,132], index: 5, kind: input, shape index: {}]   ;;  %s1674_s6 = inlined_call_operand.vmem [shape: f32[8,132], index: 6, kind: input, shape index: {}]   ;;  %s1675_s7 = inlined_call_operand.vmem [shape: f32[132,55], index: 7, kind: input, shape index: {}]   ;;  %s1676_s8 = inlined_call_operand.hbm [shape: f32[8,8], index: 8, kind: input, shape index: {}]   ;;  %s1677_s9 = inlined_call_operand.vmem [shape: f32[8,1], index: 9, kind: input, shape index: {}]   ;;  %s1678_s10 = inlined_call_operand.vmem [shape: f32[8,1], index: 10, kind: input, shape index: {}]   ;;  %s1679_s11 = inlined_call_operand.vmem [shape: f32[11,8,512], index: 11, kind: input, shape index: {}]   ;;  %s1680_s12 = inlined_call_operand.hbm [shape: f32[8,512], index: 12, kind: output, shape index: {}]  }
   0x1   :  { %18 = vsyncpa [#allocation7], 0 }
   0x2   :  { %19 = vsyncpa [#allocation5], 0  ;;  %s26_s23 = sshll.u32 %s1669_s1, 4  ;;  %s1164_s24 = smov [#allocation3]   ;;  %s27_s23 = int_to_ptr.hbm [resolvable:$true] %s26_s23 }
   0x3   :  { %s28_s25 = sshll.u32 %s1164_s24, 4  ;;  %s52_s28 = sshll.u32 %s1676_s8, 4  ;;  %s29_s25 = int_to_ptr.vmem [resolvable:$true] %s28_s25  ;;  %s53_s28 = int_to_ptr.hbm [resolvable:$true] %s52_s28 }
   0x4   :  { %s1165_s29 = smov 128   ;;  %s1166_s30 = smov 8  }
   0x5   :  { %34 = dma.hbm_to_vmem [thread:$0]  %s27_s23, 4096, %s29_s25, [#allocation4], %s1165_s29, %s1165_s29, %s1166_s30  }
   0x6   :  { %s1167_s13 = smov [#allocation6]  }
   0x7   :  { %s54_s14 = sshll.u32 %s1167_s13, 4  ;;  %s55_s14 = int_to_ptr.vmem [resolvable:$true] %s54_s14 }
   0x8   :  { %57 = dma.hbm_to_vmem [thread:$0]  %s53_s28, 128, %s55_s14, [#allocation7]  }
   0x9   :  { %1158 = dma.done.wait [#allocation4], 4096  }
   0xa   :  { %1159 = vsyncadd [#allocation4], 4294963200 }
   0xb   :  { %1160 = dma.done.wait [#allocation7], 128  }
   0xc   :  { %1161 = vsyncadd [#allocation7], 4294967168  ;;  %v89_v0 = vld [vmem:[#allocation3 + $0x78] sm:$0xff]  ;;  %v88_v1 = vld [vmem:[#allocation3 + $0x70] sm:$0xff]  ;;  %vm191_vm0 = vcmask 97280   ;;  %vm210_vm1 = vcmask 1043456  }
   0xd   :  { %v105_v2 = vld [vmem:[#allocation3 + $0xf8] sm:$0xff]  ;;  %110 = vmatpush.msra.mxu0 %v89_v0  ;;  %v104_v3 = vld [vmem:[#allocation3 + $0xf0] sm:$0xff]  ;;  %v87_v4 = vld [vmem:[#allocation3 + $0x68] sm:$0xff]  ;;  %vm278_vm2 = vcmask 31744   ;;  %s1194_s1 = smov 10   ;;  %vm696_vm6 = vcmask 64512  }
   0xe   :  { %130 = vmatpush.msra.mxu1 %v105_v2  ;;  %v103_v5 = vld [vmem:[#allocation3 + $0xe8] sm:$0xff]  ;;  %v86_v6 = vld [vmem:[#allocation3 + $0x60] sm:$0xff]  ;;  %v85_v8 = vld [vmem:[#allocation3 + $0x58] sm:$0xff]  ;;  %vm678_vm7 = vcmask 1015728   ;;  %s932_s17 = sshll.u32 %s1680_s12, 4  ;;  %s933_s17 = int_to_ptr.hbm [resolvable:$true] %s932_s17 }
   0xf   :  { %111 = vmatpush.msra.mxu0 %v88_v1  ;;  %v102_v7 = vld [vmem:[#allocation3 + $0xe0] sm:$0xff]  ;;  %v101_v9 = vld [vmem:[#allocation3 + $0xd8] sm:$0xff]  ;;  %v84_v10 = vld [vmem:[#allocation3 + $0x50] sm:$0xff] }
  0x10   :  { %131 = vmatpush.msra.mxu1 %v104_v3  ;;  %v100_v11 = vld [vmem:[#allocation3 + $0xd0] sm:$0xff]  ;;  %v83_v12 = vld [vmem:[#allocation3 + $0x48] sm:$0xff]  ;;  %v166_v14 = vld [vmem:[%s1671_s3 + $0x78] sm:$0xff] }
  0x11   :  { %112 = vmatpush.msra.mxu0 %v87_v4  ;;  %v99_v13 = vld [vmem:[#allocation3 + $0xc8] sm:$0xff]  ;;  %v165_v15 = vld [vmem:[%s1671_s3 + $0x70] sm:$0xff]  ;;  %v82_v16 = vld [vmem:[#allocation3 + $0x40] sm:$0xff]  ;;  %171 = vmatpush.msra.mxu2 %v166_v14 }
  0x12   :  { %132 = vmatpush.msra.mxu1 %v103_v5  ;;  %v98_v17 = vld [vmem:[#allocation3 + $0xc0] sm:$0xff]  ;;  %v164_v18 = vld [vmem:[%s1671_s3 + $0x68] sm:$0xff]  ;;  %v81_v19 = vld [vmem:[#allocation3 + $0x38] sm:$0xff] }
  0x13   :  { %113 = vmatpush.msra.mxu0 %v86_v6  ;;  %v97_v20 = vld [vmem:[#allocation3 + $0xb8] sm:$0xff]  ;;  %172 = vmatpush.msra.mxu2 %v165_v15  ;;  %v163_v21 = vld [vmem:[%s1671_s3 + $0x60] sm:$0xff]  ;;  %v80_v22 = vld [vmem:[#allocation3 + $0x30] sm:$0xff] }
  0x14   :  { %133 = vmatpush.msra.mxu1 %v102_v7  ;;  %v96_v23 = vld [vmem:[#allocation3 + $0xb0] sm:$0xff]  ;;  %v162_v24 = vld [vmem:[%s1671_s3 + $0x58] sm:$0xff]  ;;  %v79_v25 = vld [vmem:[#allocation3 + $0x28] sm:$0xff] }
  0x15   :  { %114 = vmatpush.msra.mxu0 %v85_v8  ;;  %173 = vmatpush.msra.mxu2 %v164_v18  ;;  %v95_v26 = vld [vmem:[#allocation3 + $0xa8] sm:$0xff]  ;;  %v161_v27 = vld [vmem:[%s1671_s3 + $0x50] sm:$0xff]  ;;  %v78_v28 = vld [vmem:[#allocation3 + $0x20] sm:$0xff] }
  0x16   :  { %134 = vmatpush.msra.mxu1 %v101_v9  ;;  %v94_v29 = vld [vmem:[#allocation3 + $0xa0] sm:$0xff]  ;;  %v160_v30 = vld [vmem:[%s1671_s3 + $0x48] sm:$0xff]  ;;  %v77_v31 = vld [vmem:[#allocation3 + $0x18] sm:$0xff] }
  0x17   :  { %115 = vmatpush.msra.mxu0 %v84_v10  ;;  %174 = vmatpush.msra.mxu2 %v163_v21  ;;  %v93_v32 = vld [vmem:[#allocation3 + $0x98] sm:$0xff]  ;;  %v159_v33 = vld [vmem:[%s1671_s3 + $0x40] sm:$0xff]  ;;  %v76_v34 = vld [vmem:[#allocation3 + $0x10] sm:$0xff] }
  0x18   :  { %135 = vmatpush.msra.mxu1 %v100_v11  ;;  %v92_v35 = vld [vmem:[#allocation3 + $0x90] sm:$0xff]  ;;  %v158_v36 = vld [vmem:[%s1671_s3 + $0x38] sm:$0xff]  ;;  %v75_v37 = vld [vmem:[#allocation3 + $0x8] sm:$0xff] }
  0x19   :  { %116 = vmatpush.msra.mxu0 %v83_v12  ;;  %175 = vmatpush.msra.mxu2 %v162_v24  ;;  %v91_v38 = vld [vmem:[#allocation3 + $0x88] sm:$0xff]  ;;  %v157_v39 = vld [vmem:[%s1671_s3 + $0x30] sm:$0xff]  ;;  %v74_v40 = vld [vmem:[#allocation3] sm:$0xff] }
  0x1a   :  { %136 = vmatpush.msra.mxu1 %v99_v13  ;;  %v90_v41 = vld [vmem:[#allocation3 + $0x80] sm:$0xff]  ;;  %v73_v43 = vld [vmem:[%s1668_s0 + $0x8] sm:$0xff]  ;;  %v154_v46 = vld [vmem:[%s1671_s3 + $0x18] sm:$0xff] }
  0x1b   :  { %117 = vmatpush.msra.mxu0 %v82_v16  ;;  %176 = vmatpush.msra.mxu2 %v161_v27  ;;  %v72_v42 = vld [vmem:[%s1668_s0] sm:$0xff]  ;;  %v156_v44 = vld [vmem:[%s1671_s3 + $0x28] sm:$0xff]  ;;  %v153_v47 = vld [vmem:[%s1671_s3 + $0x10] sm:$0xff] }
  0x1c   :  { %137 = vmatpush.msra.mxu1 %v98_v17  ;;  %v155_v45 = vld [vmem:[%s1671_s3 + $0x20] sm:$0xff]  ;;  %v152_v48 = vld [vmem:[%s1671_s3 + $0x8] sm:$0xff]  ;;  %v205_v1 = vld [vmem:[%s1673_s5 + $0x10] sm:$0xf] }
  0x1d   :  { %118 = vmatpush.msra.mxu0 %v81_v19  ;;  %177 = vmatpush.msra.mxu2 %v160_v30  ;;  %v151_v49 = vld [vmem:[%s1671_s3] sm:$0xff]  ;;  %v206_v3 = vld [vmem:[%s1673_s5 + $0x18] sm:$0xf]  ;;  %v204_v4 = vld [vmem:[%s1673_s5 + $0x8] sm:$0xff] }
  0x1e   :  { %138 = vmatpush.msra.mxu1 %v97_v20  ;;  %v1078_v50 = vld [vmem:[%s1670_s2] ss:$0 sm:$0xff]  ;;  %943 = vmatpush.msk.msra.mxu3 %vm210_vm1, %v205_v1  ;;  %v276_v8 = vld [vmem:[%s1675_s7 + $0x78] sm:$0xff]  ;;  %v275_v9 = vld [vmem:[%s1675_s7 + $0x70] sm:$0xff] }
  0x1f   :  { %119 = vmatpush.msra.mxu0 %v80_v22  ;;  %178 = vmatpush.msra.mxu2 %v159_v33  ;;  %v1079_v56 = vld [vmem:[%s1672_s4] ss:$0 sm:$0xff]  ;;  %v274_v10 = vld [vmem:[%s1675_s7 + $0x68] sm:$0xff]  ;;  %v272_v12 = vld [vmem:[%s1675_s7 + $0x58] sm:$0xff]  ;;  %v1170_v33 = vmov 11  }
  0x20   :  { %139 = vmatpush.msra.mxu1 %v96_v23  ;;  %v203_v2 = vld [vmem:[%s1673_s5] sm:$0xff]  ;;  %v271_v13 = vld [vmem:[%s1675_s7 + $0x50] sm:$0xff]  ;;  %v270_v14 = vld [vmem:[%s1675_s7 + $0x48] sm:$0xff]  ;;  %1047 = vset.pattern.permute.xlu2 %v1170_v33  ;;  %s1201_s5 = smov 118  }
  0x21   :  { %120 = vmatpush.msra.mxu0 %v79_v25  ;;  %179 = vmatpush.msra.mxu2 %v158_v36  ;;  %v273_v11 = vld [vmem:[%s1675_s7 + $0x60] sm:$0xff]  ;;  %v268_v16 = vld [vmem:[%s1675_s7 + $0x38] sm:$0xff]  ;;  %v267_v17 = vld [vmem:[%s1675_s7 + $0x30] sm:$0xff] }
  0x22   :  { %140 = vmatpush.msra.mxu1 %v95_v26  ;;  %232 = vmatpush.msra.mxu3 %v203_v2  ;;  %v269_v15 = vld [vmem:[%s1675_s7 + $0x40] sm:$0xff]  ;;  %v266_v18 = vld [vmem:[%s1675_s7 + $0x28] sm:$0xff]  ;;  %v264_v20 = vld [vmem:[%s1675_s7 + $0x18] sm:$0xff] }
  0x23   :  { %121 = vmatpush.msra.mxu0 %v78_v28  ;;  %180 = vmatpush.msra.mxu2 %v157_v39  ;;  %v265_v19 = vld [vmem:[%s1675_s7 + $0x20] sm:$0xff]  ;;  %v263_v21 = vld [vmem:[%s1675_s7 + $0x10] sm:$0xff]  ;;  %v262_v22 = vld [vmem:[%s1675_s7 + $0x8] sm:$0xff]  ;;  %v1173_v39 = vmov 23  }
  0x24   :  { %141 = vmatpush.msra.mxu1 %v94_v29  ;;  %945 = vmatpush.msk.msrb.mxu3 %vm210_vm1, %v206_v3  ;;  %v261_v23 = vld [vmem:[%s1675_s7] sm:$0xff]  ;;  %v258_v28 = vld [vmem:[%s1674_s6 + $0x8] sm:$0xff] }
  0x25   :  { %122 = vmatpush.msra.mxu0 %v77_v31  ;;  %181 = vmatpush.msra.mxu2 %v156_v44  ;;  %v277_v24 = vld [vmem:[%s1675_s7 + $0x80] sm:$0xf]  ;;  %v1168_v31 = vmov 24   ;;  %v1178_v44 = vmov 1  }
  0x26   :  { %142 = vmatpush.msra.mxu1 %v93_v32  ;;  %252 = vmatpush.msrb.mxu3 %v204_v4  ;;  %v257_v25 = vld [vmem:[%s1674_s6] sm:$0xff]  ;;  %v1169_v32 = vmov 22  }
  0x27   :  { %123 = vmatpush.msra.mxu0 %v76_v34  ;;  %182 = vmatpush.msra.mxu2 %v155_v45  ;;  %v1179_v45 = vmov 0  }
  0x28   :  { %143 = vmatpush.msra.mxu1 %v92_v35  ;;  %1049 = vset.pattern.permute.xlu0 %v1168_v31 }
  0x29   :  { %124 = vmatpush.msra.mxu0 %v75_v37  ;;  %183 = vmatpush.msra.mxu2 %v154_v46  ;;  %v1171_v37 = vmov 16   ;;  %v1180_v46 = vmov 50  }
  0x2a   :  { %144 = vmatpush.msra.mxu1 %v91_v38  ;;  %1045 = vset.pattern.permute.xlu1 %v1169_v32  ;;  %v1172_v38 = vmov 12  }
  0x2b   :  { %125 = vmatpush.msra.mxu0 %v74_v40  ;;  %184 = vmatpush.msra.mxu2 %v153_v47  ;;  %v1174_v40 = vmov 30   ;;  %v1181_v47 = vmov 26  }
  0x2c   :  { %145 = vmatpush.msra.mxu1 %v90_v41  ;;  %126 = vmatmul.f32.vlgmr.msra.gmra.mxu0 %v72_v42  ;;  %v1175_v41 = vmov 25   ;;  %v1176_v42 = vmov 13  }
  0x2d   :  { %146 = vmatmul.f32.vlgmr.msra.gmra.mxu1 %v73_v43  ;;  %185 = vmatpush.msra.mxu2 %v152_v48  ;;  %v1177_v43 = vmov 45   ;;  %v1182_v48 = vmov 14  }
  0x2e   :  { %947 = vmatpush.msk.msrb.mxu0 %vm210_vm1, %v277_v24 }
  0x2f   :  { %186 = vmatpush.msra.mxu2 %v151_v49  ;;  %v1183_v49 = vmov 15  }
  0xa9   :  { %v127_v51 = vpop.f32.mrf.mxu0 }
  0xaa   :  { %v147_v52 = vpop.f32.mrf.mxu1  ;;  %v128_v53 = vadd.f32 %v1078_v50, %v127_v51  ;;  %v1184_v50 = vmov 2   ;;  %v1185_v51 = vmov 3  }
  0xac   :  { %v148_v54 = vadd.f32 %v147_v52, %v128_v53  ;;  %v1186_v52 = vmov 27   ;;  %v1187_v53 = vmov 4  }
  0xae   :  { %v150_v55 = vmax.f32 %v148_v54, 0.0  ;;  %v1188_v54 = vmov 28  }
  0xb0   :  { %187 = vmatmul.f32.vlgmr.msra.gmra.mxu2 %v150_v55  ;;  %v1189_v55 = vmov 29  }
 0x133   :  { %v188_v57 = vpop.f32.mrf.mxu2 }
 0x134   :  { %v189_v58 = vadd.f32 %v1079_v56, %v188_v57  ;;  %v1190_v56 = vmov 17   ;;  %v1191_v57 = vmov 44  }
 0x136   :  { %v192_v59 = vsel %vm191_vm0, %v189_v58, -inf }
 0x137   :  { %193 = vmax.xlane.f32.xlu0 %v192_v59 }
 0x1aa   :  { %v194_v60 = vpop.xlane.xlu0 %193 }
 0x1ab   :  { %v195_v61 = vsub.f32 %v189_v58, %v194_v60 }
 0x1ad   :  { %v196_v62 = vmul.f32 1.442695, %v195_v61 }
 0x1af   :  { %1080 = vpow2.f32 %v196_v62 }
 0x1b5   :  { %v1081_v63 = vpop.eup %1080 }
 0x1b6   :  { %v198_v0 = vsel %vm191_vm0, %v1081_v63, 0.0 }
 0x1b7   :  { %199 = vadd.xlane.f32.xlu0 %v198_v0 }
 0x22a   :  { %v200_v5 = vpop.xlane.xlu0 %199 }
 0x22b   :  { %1082 = vrcp.f32 %v200_v5 }
 0x231   :  { %v1083_v6 = vpop.eup %1082 }
 0x232   :  { %v202_v7 = vmul.f32 %v1083_v6, %v1081_v63  ;;  %v1439_v6 = vld [vmem:[%s1679_s11 + $0x18] sm:$0xff] }
 0x234   :  { %944 = vmatmul.msk.f32.vlgmr.msra.gmra.mxu3 %vm191_vm0, %v202_v7 }
 0x235   :  { %285 = vmatpush.msra.mxu3 %v276_v8  ;;  %v1445_v8 = vld [vmem:[%s1679_s11 + $0x38] sm:$0xff] }
 0x237   :  { %286 = vmatpush.msra.mxu3 %v275_v9 }
 0x239   :  { %287 = vmatpush.msra.mxu3 %v274_v10  ;;  %v1451_v10 = vld [vmem:[%s1679_s11 + $0x58] sm:$0xff] }
 0x23b   :  { %288 = vmatpush.msra.mxu3 %v273_v11 }
 0x23c   :  { %946 = vmatmul.msk.f32.vlgmr.msrb.gmra.mxu3 %vm191_vm0, %v202_v7 }
 0x23d   :  { %289 = vmatpush.msra.mxu3 %v272_v12 }
 0x23f   :  { %290 = vmatpush.msra.mxu3 %v271_v13 }
 0x241   :  { %291 = vmatpush.msra.mxu3 %v270_v14 }
 0x243   :  { %292 = vmatpush.msra.mxu3 %v269_v15 }
 0x245   :  { %293 = vmatpush.msra.mxu3 %v268_v16  ;;  %v1192_v16 = vmov 46  }
 0x247   :  { %294 = vmatpush.msra.mxu3 %v267_v17  ;;  %v1458_v17 = vld [vmem:[%s1679_s11 + $0x78] sm:$0xff] }
 0x249   :  { %295 = vmatpush.msra.mxu3 %v266_v18 }
 0x24b   :  { %296 = vmatpush.msra.mxu3 %v265_v19 }
 0x24d   :  { %297 = vmatpush.msra.mxu3 %v264_v20 }
 0x24f   :  { %298 = vmatpush.msra.mxu3 %v263_v21 }
 0x251   :  { %299 = vmatpush.msra.mxu3 %v262_v22  ;;  %v1465_v22 = vld [vmem:[%s1679_s11 + $0x98] sm:$0xff] }
 0x253   :  { %300 = vmatpush.msra.mxu3 %v261_v23  ;;  %v1193_v23 = vmov 47  }
 0x2b7   :  { %v234_v26 = vpop.f32.mrf.mxu3 }
 0x2b8   :  { %v259_v27 = vmul.f32 %v257_v25, %v234_v26 }
 0x2ba   :  { %301 = vmatmul.f32.vlgmr.msra.gmra.mxu3 %v259_v27 }
 0x2bf   :  { %v254_v29 = vpop.f32.mrf.mxu3 }
 0x2c0   :  { %v260_v30 = vmul.f32 %v258_v28, %v254_v29 }
 0x2c2   :  { %948 = vmatmul.msk.f32.vlgmr.msrb.gmra.mxu0 %vm278_vm2, %v260_v30 }
 0x33d   :  { %v302_v34 = vpop.f32.mrf.mxu3 }
 0x33f   :  { %v322_v35 = vpop.f32.mrf.mxu0 }
 0x340   :  { %v1410_v36 = vadd.f32 %v322_v35, %v302_v34 }
 0x342   :  { %624 = vperm.xlu0 %1049, %v1410_v36   ;;  %561 = vperm.xlu2 %1047, %v1410_v36  }
 0x343   :  { %612 = vperm.xlu1 %1045, %v1410_v36  }
 0x34a   :  { %1060 = vset.pattern.permute.xlu0 %v1171_v37  ;;  %1048 = vset.pattern.permute.xlu2 %v1172_v38  ;;  %v1476_v37 = vld [vmem:[%s1679_s11 + $0xb8] sm:$0xff] }
 0x34b   :  { %1046 = vset.pattern.permute.xlu1 %v1173_v39  ;;  %592 = vperm.xlu0 %1060, %v1410_v36  }
 0x34c   :  { %567 = vperm.xlu2 %1048, %v1410_v36   ;;  %618 = vperm.xlu1 %1046, %v1410_v36  }
 0x353   :  { %1065 = vset.pattern.permute.xlu0 %v1174_v40 }
 0x354   :  { %1051 = vset.pattern.permute.xlu2 %v1175_v41  ;;  %1050 = vset.pattern.permute.xlu1 %v1176_v42 }
 0x355   :  { %662 = vperm.xlu0 %1065, %v1410_v36   ;;  %630 = vperm.xlu2 %1051, %v1410_v36  }
 0x356   :  { %573 = vperm.xlu1 %1050, %v1410_v36  }
 0x35d   :  { %1067 = vset.pattern.permute.xlu0 %v1177_v43  ;;  %1053 = vset.pattern.permute.xlu2 %v1178_v44 }
 0x35e   :  { %1052 = vset.pattern.permute.xlu1 %v1179_v45  ;;  %348 = vperm.xlu0 %1067, %v1410_v36  }
 0x35f   :  { %527 = vperm.xlu2 %1053, %v1410_v36   ;;  %520 = vperm.xlu1 %1052, %v1410_v36  }
 0x366   :  { %1072 = vset.pattern.permute.xlu0 %v1180_v46  ;;  %v1490_v46 = vld [vmem:[%s1679_s11 + $0xf8] sm:$0xff] }
 0x367   :  { %1055 = vset.pattern.permute.xlu2 %v1181_v47  ;;  %1054 = vset.pattern.permute.xlu1 %v1182_v48 }
 0x368   :  { %433 = vperm.xlu0 %1072, %v1410_v36   ;;  %636 = vperm.xlu2 %1055, %v1410_v36  }
 0x369   :  { %579 = vperm.xlu1 %1054, %v1410_v36  }
 0x370   :  { %1057 = vset.pattern.permute.xlu2 %v1183_v49  ;;  %1077 = vset.pattern.permute.xlu0 %v1179_v45  ;;  %v1485_v45 = vld [vmem:[%s1679_s11 + $0xd8] sm:$0xff] }
 0x371   :  { %1056 = vset.pattern.permute.xlu1 %v1184_v50  ;;  %585 = vperm.xlu2 %1057, %v1410_v36  }
 0x372   :  { %534 = vperm.xlu1 %1056, %v1410_v36  }
 0x379   :  { %1059 = vset.pattern.permute.xlu2 %v1185_v51  ;;  %v1496_v51 = vld [vmem:[%s1679_s11 + $0x118] sm:$0xff] }
 0x37a   :  { %1058 = vset.pattern.permute.xlu1 %v1186_v52  ;;  %541 = vperm.xlu2 %1059, %v1410_v36  }
 0x37b   :  { %642 = vperm.xlu1 %1058, %v1410_v36  }
 0x382   :  { %1062 = vset.pattern.permute.xlu2 %v1187_v53 }
 0x383   :  { %1061 = vset.pattern.permute.xlu1 %v1188_v54  ;;  %548 = vperm.xlu2 %1062, %v1410_v36  }
 0x384   :  { %648 = vperm.xlu1 %1061, %v1410_v36  }
 0x38b   :  { %1064 = vset.pattern.permute.xlu2 %v1189_v55 }
 0x38c   :  { %1063 = vset.pattern.permute.xlu1 %v1190_v56  ;;  %655 = vperm.xlu2 %1064, %v1410_v36  }
 0x38d   :  { %599 = vperm.xlu1 %1063, %v1410_v36  }
 0x394   :  { %1066 = vset.pattern.permute.xlu2 %v1191_v57 }
 0x395   :  { %331 = vperm.xlu2 %1066, %v1410_v36   ;;  %1068 = vset.pattern.permute.xlu1 %v1192_v16 }
 0x39c   :  { %v562_v58 = vpop.permute.xlu2 %561 }
 0x39d   :  { %1069 = vset.pattern.permute.xlu2 %v1193_v23  ;;  %v564_v35 = vmul.f32 %v562_v58, %v1439_v6 }
 0x3a6   :  { %v568_v59 = vpop.permute.xlu2 %567 }
 0x3a7   :  { %v570_v33 = vmul.f32 %v1445_v8, %v568_v59 }
 0x3a9   :  { %v571_v41 = vadd.f32 %v570_v33, %v564_v35  ;;  %v953_v33 = vld [vmem:[%s1679_s11 + $0x40] sm:$0xff]  ;;  %v955_v35 = vld [vmem:[%s1679_s11 + $0x50] sm:$0xff] }
 0x3af   :  { %v631_v60 = vpop.permute.xlu2 %630 }
 0x3b0   :  { %v633_v32 = vmul.f32 %v1458_v17, %v631_v60 }
 0x3b4   :  { %v625_v11 = vpop.permute.xlu0 %624 }
 0x3b5   :  { %v613_v61 = vpop.permute.xlu1 %612  ;;  %v627_v27 = vmul.f32 %v1451_v10, %v625_v11 }
 0x3b6   :  { %v615_v19 = vmul.f32 %v613_v61, %v1439_v6 }
 0x3b9   :  { %v528_v62 = vpop.permute.xlu2 %527 }
 0x3ba   :  { %v530_v9 = vmul.f32 %v1445_v8, %v528_v62 }
 0x3bd   :  { %v593_v31 = vpop.permute.xlu0 %592 }
 0x3be   :  { %v619_v63 = vpop.permute.xlu1 %618  ;;  %v595_v61 = vmul.f32 %v1476_v37, %v593_v31 }
 0x3bf   :  { %v621_v13 = vmul.f32 %v1445_v8, %v619_v63 }
 0x3c1   :  { %v622_v24 = vadd.f32 %v621_v13, %v615_v19 }
 0x3c2   :  { %v637_v0 = vpop.permute.xlu2 %636 }
 0x3c3   :  { %v628_v29 = vadd.f32 %v627_v27, %v622_v24  ;;  %v639_v39 = vmul.f32 %v1465_v22, %v637_v0  ;;  %v327_v27 = vld [vmem:[%s1679_s11 + $0x10] sm:$0xff] }
 0x3c5   :  { %v634_v34 = vadd.f32 %v633_v32, %v628_v29  ;;  %v950_v29 = vld [vmem:[%s1679_s11 + $0x28] sm:$0xff] }
 0x3c7   :  { %v640_v43 = vadd.f32 %v639_v39, %v634_v34  ;;  %v663_v52 = vpop.permute.xlu0 %662  ;;  %v954_v34 = vld [vmem:[%s1679_s11 + $0x48] sm:$0xff] }
 0x3c8   :  { %v574_v1 = vpop.permute.xlu1 %573  ;;  %v665_v57 = vmul.f32 %v1496_v51, %v663_v52 }
 0x3c9   :  { %v576_v38 = vmul.f32 %v1451_v10, %v574_v1 }
 0x3cb   :  { %v586_v3 = vpop.permute.xlu2 %585  ;;  %v577_v44 = vadd.f32 %v576_v38, %v571_v41 }
 0x3cc   :  { %v588_v56 = vmul.f32 %v1465_v22, %v586_v3  ;;  %v1196_v3 = vmov 49  }
 0x3d1   :  { %v521_v2 = vpop.permute.xlu1 %520 }
 0x3d2   :  { %v523_v7 = vmul.f32 %v521_v2, %v1439_v6  ;;  %v1195_v2 = vmov 48  }
 0x3d4   :  { %v542_v5 = vpop.permute.xlu2 %541  ;;  %v531_v14 = vadd.f32 %v530_v9, %v523_v7  ;;  %v1199_v7 = vmov 53   ;;  %v1200_v9 = vmov 54  }
 0x3d5   :  { %v544_v20 = vmul.f32 %v1458_v17, %v542_v5  ;;  %v1198_v5 = vmov 52  }
 0x3db   :  { %v580_v4 = vpop.permute.xlu1 %579 }
 0x3dc   :  { %v582_v42 = vmul.f32 %v1458_v17, %v580_v4  ;;  %v1197_v4 = vmov 51  }
 0x3dd   :  { %v549_v18 = vpop.permute.xlu2 %548 }
 0x3de   :  { %v551_v25 = vmul.f32 %v1465_v22, %v549_v18  ;;  %v583_v53 = vadd.f32 %v582_v42, %v577_v44 }
 0x3e0   :  { %v589_v59 = vadd.f32 %v588_v56, %v583_v53  ;;  %v958_v56 = vld [vmem:[%s1679_s11 + $0x68] sm:$0xff] }
 0x3e2   :  { %v596_v63 = vadd.f32 %v595_v61, %v589_v59 }
 0x3e4   :  { %v535_v12 = vpop.permute.xlu1 %534 }
 0x3e5   :  { %v537_v15 = vmul.f32 %v1451_v10, %v535_v12  ;;  %v516_v12 = vlaneseq }
 0x3e6   :  { %v656_v47 = vpop.permute.xlu2 %655 }
 0x3e7   :  { %v538_v21 = vadd.f32 %v537_v15, %v531_v14  ;;  %v658_v54 = vmul.f32 %v1490_v46, %v656_v47  ;;  %v1513_v13 = vand.u32 127, %v516_v12 }
 0x3e9   :  { %v545_v26 = vadd.f32 %v544_v20, %v538_v21  ;;  %vm604_vm3 = vcmp.lt.s32.totalorder %v1513_v13, 4  ;;  %vm553_vm4 = vcmp.lt.s32.totalorder %v1513_v13, 6  ;;  %vm667_vm5 = vcmp.lt.s32.totalorder %v1513_v13, 2 }
 0x3eb   :  { %v552_v28 = vadd.f32 %v551_v25, %v545_v26  ;;  %v325_v25 = vld [vmem:[%s1679_s11] sm:$0xff]  ;;  %v326_v26 = vld [vmem:[%s1679_s11 + $0x8] sm:$0xff] }
 0x3ed   :  { %555 = vrot.lane.b32.xlu1 %v552_v28, %s1194_s1  ;;  %v643_v30 = vpop.permute.xlu1 %642  ;;  %v949_v28 = vld [vmem:[%s1679_s11 + $0x20] sm:$0xff] }
 0x3ee   :  { %v645_v40 = vmul.f32 %v1476_v37, %v643_v30  ;;  %v951_v30 = vld [vmem:[%s1679_s11 + $0x30] sm:$0xff] }
 0x3ef   :  { %v332_v11 = vpop.permute.xlu2 %331 }
 0x3f0   :  { %v646_v49 = vadd.f32 %v645_v40, %v640_v43  ;;  %v337_v31 = vmul.f32 %v1439_v6, %v332_v11  ;;  %v334_v39 = vmul.f32 %v332_v11, %v325_v25  ;;  %v335_v40 = vmul.f32 %v332_v11, %v326_v26 }
 0x3f1   :  { %v336_v41 = vmul.f32 %v332_v11, %v327_v27  ;;  %v969_v27 = vld [vmem:[%s1679_s11 + $0xc0] sm:$0xff] }
 0x3f6   :  { %v649_v48 = vpop.permute.xlu1 %648 }
 0x3f7   :  { %v651_v50 = vmul.f32 %v1485_v45, %v649_v48 }
 0x3f9   :  { %v652_v55 = vadd.f32 %v651_v50, %v646_v49 }
 0x3fb   :  { %v659_v58 = vadd.f32 %v658_v54, %v652_v55  ;;  %v957_v55 = vld [vmem:[%s1679_s11 + $0x60] sm:$0xff] }
 0x3fd   :  { %v666_v60 = vadd.f32 %v665_v57, %v659_v58 }
 0x3ff   :  { %669 = vrot.lane.b32.xlu1 %v666_v60, %s1194_s1  ;;  %v600_v62 = vpop.permute.xlu1 %599 }
 0x400   :  { %v602_v0 = vmul.f32 %v1485_v45, %v600_v62  ;;  %v961_v62 = vld [vmem:[%s1679_s11 + $0x80] sm:$0xff] }
 0x402   :  { %v603_v1 = vadd.f32 %v602_v0, %v596_v63  ;;  %v962_v63 = vld [vmem:[%s1679_s11 + $0x88] sm:$0xff]  ;;  %v963_v0 = vld [vmem:[%s1679_s11 + $0x90] sm:$0xff] }
 0x404   :  { %606 = vrot.lane.b32.xlu2 %v603_v1, %s1194_s1 }
 0x407   :  { %365 = vperm.xlu1 %1068, %v1410_v36  }
 0x40c   :  { %382 = vperm.xlu2 %1069, %v1410_v36  }
 0x40f   :  { %1070 = vset.pattern.permute.xlu1 %v1195_v2 }
 0x410   :  { %399 = vperm.xlu1 %1070, %v1410_v36  }
 0x414   :  { %1071 = vset.pattern.permute.xlu2 %v1196_v3 }
 0x415   :  { %416 = vperm.xlu2 %1071, %v1410_v36  }
 0x418   :  { %1073 = vset.pattern.permute.xlu1 %v1197_v4 }
 0x419   :  { %450 = vperm.xlu1 %1073, %v1410_v36  }
 0x41d   :  { %1074 = vset.pattern.permute.xlu2 %v1198_v5 }
 0x41e   :  { %467 = vperm.xlu2 %1074, %v1410_v36  }
 0x421   :  { %1075 = vset.pattern.permute.xlu1 %v1199_v7 }
 0x422   :  { %484 = vperm.xlu1 %1075, %v1410_v36  }
 0x426   :  { %1076 = vset.pattern.permute.xlu2 %v1200_v9 }
 0x427   :  { %501 = vperm.xlu2 %1076, %v1410_v36   ;;  %v349_v36 = vpop.permute.xlu0 %348 }
 0x428   :  { %v354_v32 = vmul.f32 %v1445_v8, %v349_v36  ;;  %v351_v42 = vmul.f32 %v949_v28, %v349_v36  ;;  %v352_v8 = vmul.f32 %v950_v29, %v349_v36  ;;  %v353_v43 = vmul.f32 %v951_v30, %v349_v36  ;;  %v970_v28 = vld [vmem:[%s1679_s11 + $0xc8] sm:$0xff]  ;;  %v971_v29 = vld [vmem:[%s1679_s11 + $0xd0] sm:$0xff] }
 0x42a   :  { %v358_v44 = vadd.f32 %v354_v32, %v337_v31  ;;  %v355_v50 = vadd.f32 %v351_v42, %v334_v39  ;;  %v356_v52 = vadd.f32 %v352_v8, %v335_v40  ;;  %v357_v53 = vadd.f32 %v353_v43, %v336_v41 }
 0x42f   :  { %v434_v12 = vpop.permute.xlu0 %433 }
 0x430   :  { %v439_v25 = vmul.f32 %v1485_v45, %v434_v12  ;;  %v973_v45 = vld [vmem:[%s1679_s11 + $0xe0] sm:$0xff]  ;;  %v436_v41 = vmul.f32 %v969_v27, %v434_v12  ;;  %v438_v42 = vmul.f32 %v971_v29, %v434_v12 }
 0x45e   :  { %v607_v15 = vpop.permute.xlu2 %606 }
 0x45f   :  { %v556_v14 = vpop.permute.xlu1 %555  ;;  %v609_v16 = vsel %vm604_vm3, %v607_v15, 0.0 }
 0x460   :  { %v558_v18 = vsel %vm553_vm4, %v556_v14, 0.0 }
 0x461   :  { %v610_v19 = vadd.f32 %v609_v16, %v558_v18  ;;  %v965_v18 = vld [vmem:[%s1679_s11 + $0xa0] sm:$0xff] }
 0x466   :  { %v383_v24 = vpop.permute.xlu2 %382 }
 0x467   :  { %v388_v58 = vmul.f32 %v1458_v17, %v383_v24  ;;  %v385_v1 = vmul.f32 %v957_v55, %v383_v24  ;;  %v386_v2 = vmul.f32 %v958_v56, %v383_v24  ;;  %v979_v55 = vld [vmem:[%s1679_s11 + $0x110] sm:$0xff] }
 0x46f   :  { %v417_v57 = vpop.permute.xlu2 %416 }
 0x471   :  { %v670_v20 = vpop.permute.xlu1 %669 }
 0x472   :  { %v672_v21 = vsel %vm667_vm5, %v670_v20, 0.0  ;;  %v967_v20 = vld [vmem:[%s1679_s11 + $0xb0] sm:$0xff] }
 0x473   :  { %v673_v23 = vadd.f32 %v672_v21, %v610_v19  ;;  %v966_v19 = vld [vmem:[%s1679_s11 + $0xa8] sm:$0xff]  ;;  %v422_v21 = vmul.f32 %v1476_v37, %v417_v57  ;;  %v419_v37 = vmul.f32 %v965_v18, %v417_v57  ;;  %v421_v31 = vmul.f32 %v967_v20, %v417_v57 }
 0x474   :  { %v420_v30 = vmul.f32 %v966_v19, %v417_v57 }
 0x475   :  { %675 = vrot.lane.b32.xlu0 %v673_v23, %s1201_s5 }
 0x478   :  { %v468_v32 = vpop.permute.xlu2 %467 }
 0x479   :  { %v366_v38 = vpop.permute.xlu1 %365 }
 0x47a   :  { %v371_v6 = vmul.f32 %v1451_v10, %v366_v38  ;;  %v368_v47 = vmul.f32 %v953_v33, %v366_v38  ;;  %v369_v48 = vmul.f32 %v954_v34, %v366_v38  ;;  %v370_v49 = vmul.f32 %v955_v35, %v366_v38  ;;  %v959_v10 = vld [vmem:[%s1679_s11 + $0x70] sm:$0xff]  ;;  %v974_v34 = vld [vmem:[%s1679_s11 + $0xe8] sm:$0xff] }
 0x47b   :  { %v387_v3 = vmul.f32 %v959_v10, %v383_v24  ;;  %v975_v35 = vld [vmem:[%s1679_s11 + $0xf0] sm:$0xff] }
 0x47c   :  { %v375_v54 = vadd.f32 %v371_v6, %v358_v44  ;;  %v372_v59 = vadd.f32 %v368_v47, %v355_v50  ;;  %v373_v60 = vadd.f32 %v369_v48, %v356_v52  ;;  %v374_v61 = vadd.f32 %v370_v49, %v357_v53  ;;  %v977_v53 = vld [vmem:[%s1679_s11 + $0x100] sm:$0xff] }
 0x47d   :  { %v437_v6 = vmul.f32 %v970_v28, %v434_v12  ;;  %v988_v12 = vld [vmem:[%s1679_s11 + $0x158] sm:$0xff] }
 0x47e   :  { %v392_v4 = vadd.f32 %v388_v58, %v375_v54  ;;  %v389_v14 = vadd.f32 %v385_v1, %v372_v59  ;;  %v390_v15 = vadd.f32 %v386_v2, %v373_v60  ;;  %v391_v16 = vadd.f32 %v387_v3, %v374_v61  ;;  %v978_v54 = vld [vmem:[%s1679_s11 + $0x108] sm:$0xff]  ;;  %v984_v1 = vld [vmem:[%s1679_s11 + $0x138] sm:$0xff]  ;;  %v985_v2 = vld [vmem:[%s1679_s11 + $0x140] sm:$0xff] }
 0x47f   :  { %v470_v59 = vmul.f32 %v977_v53, %v468_v32  ;;  %v471_v60 = vmul.f32 %v978_v54, %v468_v32  ;;  %v472_v61 = vmul.f32 %v979_v55, %v468_v32  ;;  %v987_v3 = vld [vmem:[%s1679_s11 + $0x150] sm:$0xff] }
 0x482   :  { %v400_v17 = vpop.permute.xlu1 %399 }
 0x483   :  { %v402_v5 = vmul.f32 %v961_v62, %v400_v17  ;;  %v403_v7 = vmul.f32 %v962_v63, %v400_v17  ;;  %v404_v9 = vmul.f32 %v963_v0, %v400_v17  ;;  %v405_v11 = vmul.f32 %v1465_v22, %v400_v17  ;;  %v982_v63 = vld [vmem:[%s1679_s11 + $0x128] sm:$0xff]  ;;  %v983_v0 = vld [vmem:[%s1679_s11 + $0x130] sm:$0xff] }
 0x484   :  { %v473_v62 = vmul.f32 %v1496_v51, %v468_v32  ;;  %v986_v51 = vld [vmem:[%s1679_s11 + $0x148] sm:$0xff]  ;;  %v695_v32 = vld [vmem:[#allocation6] sm:$0xff] }
 0x485   :  { %v409_v23 = vadd.f32 %v405_v11, %v392_v4  ;;  %v406_v22 = vadd.f32 %v402_v5, %v389_v14  ;;  %v407_v24 = vadd.f32 %v403_v7, %v390_v15  ;;  %v408_v36 = vadd.f32 %v404_v9, %v391_v16  ;;  %v502_v4 = vpop.permute.xlu2 %501 }
 0x486   :  { %v504_v19 = vmul.f32 %v985_v2, %v502_v4  ;;  %v505_v20 = vmul.f32 %v986_v51, %v502_v4 }
 0x487   :  { %v426_v26 = vadd.f32 %v422_v21, %v409_v23  ;;  %v423_v38 = vadd.f32 %v419_v37, %v406_v22  ;;  %v424_v39 = vadd.f32 %v420_v30, %v407_v24  ;;  %v425_v40 = vadd.f32 %v421_v31, %v408_v36 }
 0x488   :  { %v506_v21 = vmul.f32 %v987_v3, %v502_v4 }
 0x489   :  { %v443_v33 = vadd.f32 %v439_v25, %v426_v26  ;;  %v440_v49 = vadd.f32 %v436_v41, %v423_v38  ;;  %v441_v50 = vadd.f32 %v437_v6, %v424_v39  ;;  %v442_v52 = vadd.f32 %v438_v42, %v425_v40  ;;  %v897_v39 = vld [vmem:[%s1677_s9] sm:$0xff]  ;;  %s1202_s9 = smov [#allocation8]  }
 0x48a   :  { %v507_v25 = vmul.f32 %v988_v12, %v502_v4  ;;  %900 = vperm.xlu0 %1077, %v897_v39   ;;  %v907_v40 = vld [vmem:[%s1678_s10] sm:$0xff]  ;;  %s930_s10 = sshll.u32 %s1202_s9, 4  ;;  %s931_s10 = int_to_ptr.vmem [resolvable:$true] %s930_s10 }
 0x48b   :  { %v451_v8 = vpop.permute.xlu1 %450 }
 0x48c   :  { %v453_v43 = vmul.f32 %v973_v45, %v451_v8  ;;  %v454_v44 = vmul.f32 %v974_v34, %v451_v8  ;;  %v455_v47 = vmul.f32 %v975_v35, %v451_v8  ;;  %v456_v48 = vmul.f32 %v1490_v46, %v451_v8  ;;  %v981_v46 = vld [vmem:[%s1679_s11 + $0x120] sm:$0xff] }
 0x48d   :  { %v686_v45 = vadd.s32 384, %v1513_v13 }
 0x48e   :  { %v457_v56 = vadd.f32 %v453_v43, %v440_v49  ;;  %v458_v10 = vadd.f32 %v454_v44, %v441_v50  ;;  %v459_v57 = vadd.f32 %v455_v47, %v442_v52  ;;  %v460_v58 = vadd.f32 %v456_v48, %v443_v33 }
 0x48f   :  { %vm690_vm8 = vcmp.lt.s32.totalorder %v686_v45, 508 }
 0x490   :  { %v474_v17 = vadd.f32 %v470_v59, %v457_v56  ;;  %v475_v5 = vadd.f32 %v471_v60, %v458_v10  ;;  %v476_v7 = vadd.f32 %v472_v61, %v459_v57  ;;  %v477_v9 = vadd.f32 %v473_v62, %v460_v58 }
 0x492   :  { %910 = vperm.xlu0 %1077, %v907_v40  }
 0x494   :  { %v485_v11 = vpop.permute.xlu1 %484 }
 0x495   :  { %v487_v14 = vmul.f32 %v981_v46, %v485_v11  ;;  %v488_v15 = vmul.f32 %v982_v63, %v485_v11  ;;  %v489_v16 = vmul.f32 %v983_v0, %v485_v11  ;;  %v490_v18 = vmul.f32 %v984_v1, %v485_v11 }
 0x497   :  { %v491_v23 = vadd.f32 %v487_v14, %v474_v17  ;;  %v492_v22 = vadd.f32 %v488_v15, %v475_v5  ;;  %v493_v24 = vadd.f32 %v489_v16, %v476_v7  ;;  %v494_v36 = vadd.f32 %v490_v18, %v477_v9 }
 0x499   :  { %v1632_v26 = vadd.f32 %v504_v19, %v491_v23  ;;  %v1634_v27 = vadd.f32 %v505_v20, %v492_v22  ;;  %v1636_v28 = vadd.f32 %v506_v21, %v493_v24  ;;  %v511_v29 = vadd.f32 %v507_v25, %v494_v36 }
 0x49b   :  { %715 = vmatpush.msrb.mxu1 %v1632_v26  ;;  %v780_v37 = vmul.f32 %v1632_v26, %v1632_v26  ;;  %735 = vmatpush.msrb.mxu2 %v1634_v27  ;;  %v781_v30 = vmul.f32 %v1634_v27, %v1634_v27  ;;  %v782_v31 = vmul.f32 %v1636_v28, %v1636_v28 }
 0x49c   :  { %755 = vmatpush.msra.mxu0 %v1636_v28  ;;  %515 = vst [vmem:[#allocation2 + $0x18] sm:$0xff] %v511_v29  ;;  %998 = vmatmul.msk.f32.vlgmr.msrb.gmra.mxu2 %vm696_vm6, %v695_v32 }
 0x49d   :  { %799 = vmatpush.msra.mxu2 %v780_v37  ;;  %819 = vmatpush.msrb.mxu3 %v781_v30 }
 0x49e   :  { %839 = vmatpush.msrb.mxu0 %v782_v31  ;;  %997 = vmatmul.msk.f32.vlgmr.msrb.gmra.mxu1 %vm696_vm6, %v695_v32 }
 0x49f   :  { %999 = vmatmul.msk.f32.vlgmr.msra.gmra.mxu0 %vm696_vm6, %v695_v32  ;;  %1003 = vmatmul.msk.f32.vlgmr.msrb.gmra.mxu3 %vm696_vm6, %v695_v32 }
 0x4a4   :  { %1002 = vmatmul.msk.f32.vlgmr.msra.gmra.mxu2 %vm696_vm6, %v695_v32 }
 0x4a7   :  { %1004 = vmatmul.msk.f32.vlgmr.msrb.gmra.mxu0 %vm696_vm6, %v695_v32 }
 0x4e7   :  { %v676_v33 = vpop.permute.xlu0 %675 }
 0x4e8   :  { %679 = vst.msk [vmem:[#allocation2 + $0x18] sm:$0xff] %vm678_vm7, %v676_v33 }
 0x4ef   :  { %v683_v34 = vld [vmem:[#allocation2 + $0x18] sm:$0xff] }
 0x4f0   :  { %v694_v35 = vsel %vm690_vm8, %v683_v34, 0.0  ;;  %1000 = vmatpush.msk.msra.mxu1 %vm690_vm8, %v683_v34 }
 0x4f1   :  { %v783_v38 = vmul.f32 %v694_v35, %v694_v35  ;;  %1001 = vmatmul.msk.f32.vlgmr.msra.gmra.mxu1 %vm696_vm6, %v695_v32 }
 0x4f3   :  { %859 = vmatpush.msrb.mxu1 %v783_v38 }
 0x4f9   :  { %1005 = vmatmul.msk.f32.vlgmr.msrb.gmra.mxu1 %vm696_vm6, %v695_v32 }
 0x4fc   :  { %v901_v0 = vpop.permute.xlu0 %900 }
 0x504   :  { %v911_v19 = vpop.permute.xlu0 %910 }
 0x51b   :  { %v717_v13 = vpop.f32.mrf.mxu1 }
 0x51c   :  { %v757_v6 = vpop.f32.mrf.mxu0 }
 0x51f   :  { %v737_v41 = vpop.f32.mrf.mxu2 }
 0x520   :  { %v864_v42 = vadd.f32 %v737_v41, %v717_v13 }
 0x522   :  { %v821_v43 = vpop.f32.mrf.mxu3  ;;  %v865_v44 = vadd.f32 %v864_v42, %v757_v6 }
 0x524   :  { %v841_v50 = vpop.f32.mrf.mxu0 }
 0x527   :  { %v801_v8 = vpop.f32.mrf.mxu2 }
 0x528   :  { %v870_v49 = vadd.f32 %v821_v43, %v801_v8 }
 0x52a   :  { %v871_v52 = vadd.f32 %v870_v49, %v841_v50 }
 0x56e   :  { %v777_v47 = vpop.f32.mrf.mxu1 }
 0x56f   :  { %v866_v48 = vadd.f32 %v865_v44, %v777_v47 }
 0x571   :  { %867 = vadd.xlane.f32.xlu1 %v866_v48 }
 0x576   :  { %v861_v53 = vpop.f32.mrf.mxu1 }
 0x577   :  { %v872_v54 = vadd.f32 %v871_v52, %v861_v53 }
 0x579   :  { %873 = vadd.xlane.f32.xlu2 %v872_v54 }
 0x5e4   :  { %v868_v55 = vpop.xlane.xlu1 %867 }
 0x5e5   :  { %v869_v56 = vmul.f32 0.000984252, %v868_v55 }
 0x5e7   :  { %v876_v57 = vmul.f32 %v869_v56, %v869_v56  ;;  %v889_v51 = vsub.f32 %v1632_v26, %v869_v56  ;;  %v890_v3 = vsub.f32 %v1634_v27, %v869_v56  ;;  %v891_v4 = vsub.f32 %v1636_v28, %v869_v56 }
 0x5e8   :  { %v892_v17 = vsub.f32 %v683_v34, %v869_v56 }
 0x5ec   :  { %v874_v10 = vpop.xlane.xlu2 %873 }
 0x5ed   :  { %v875_v58 = vmul.f32 0.000984252, %v874_v10 }
 0x5ef   :  { %v877_v46 = vsub.f32 %v875_v58, %v876_v57 }
 0x5f1   :  { %v878_v59 = vadd.f32 1e-05, %v877_v46 }
 0x5f3   :  { %1084 = vrsqrt.f32 %v878_v59  ;;  %vm885_vm10 = vweird.f32 %v878_v59 }
 0x5f9   :  { %v1085_v60 = vpop.eup %1084 }
 0x5fa   :  { %v880_v61 = vmul.f32 %v1085_v60, %v878_v59  ;;  %vm886_vm9 = vweird.f32 %v1085_v60 }
 0x5fb   :  { %vm887_vm11 = vmor %vm885_vm10, %vm886_vm9 }
 0x5fc   :  { %v881_v62 = vmul.f32 %v1085_v60, %v880_v61 }
 0x5fe   :  { %v882_v63 = vmul.f32 0.5, %v881_v62 }
 0x600   :  { %v883_v1 = vsub.f32 1.5, %v882_v63 }
 0x602   :  { %v884_v2 = vmul.f32 %v1085_v60, %v883_v1 }
 0x604   :  { %v888_v5 = vsel %vm887_vm11, %v1085_v60, %v884_v2 }
 0x605   :  { %v893_v7 = vmul.f32 %v889_v51, %v888_v5  ;;  %v894_v9 = vmul.f32 %v890_v3, %v888_v5  ;;  %v895_v11 = vmul.f32 %v891_v4, %v888_v5  ;;  %v896_v12 = vmul.f32 %v892_v17, %v888_v5 }
 0x607   :  { %v903_v14 = vmul.f32 %v901_v0, %v893_v7  ;;  %v904_v15 = vmul.f32 %v901_v0, %v894_v9  ;;  %v905_v16 = vmul.f32 %v901_v0, %v895_v11  ;;  %v906_v18 = vmul.f32 %v901_v0, %v896_v12 }
 0x609   :  { %v913_v20 = vadd.f32 %v911_v19, %v903_v14  ;;  %v914_v21 = vadd.f32 %v911_v19, %v904_v15  ;;  %v915_v23 = vadd.f32 %v911_v19, %v905_v16  ;;  %v916_v22 = vadd.f32 %v911_v19, %v906_v18 }
 0x60b   :  { %v917_v24 = vmax.f32 %v913_v20, 0.0  ;;  %v918_v36 = vmax.f32 %v914_v21, 0.0  ;;  %v919_v25 = vmax.f32 %v915_v23, 0.0  ;;  %v920_v26 = vmax.f32 %v916_v22, 0.0 }
 0x60d   :  { %921 = vst [vmem:[#allocation8] sm:$0xff] %v917_v24 }
 0x60e   :  { %922 = vst [vmem:[#allocation8 + $0x8] sm:$0xff] %v918_v36 }
 0x60f   :  { %923 = vst [vmem:[#allocation8 + $0x10] sm:$0xff] %v919_v25 }
 0x610   :  { %924 = vst [vmem:[#allocation8 + $0x18] sm:$0xff] %v920_v26 }
 0x611   :  { %935 = dma.vmem_to_hbm [thread:$0]  %s931_s10, 512, %s933_s17, [#allocation5]  }
 0x612   :  { %1162 = dma.done.wait [#allocation5], 512  }
 0x613   :  { %1163 = vsyncadd [#allocation5], 4294966784 }
 0x614   :  { %940 = vsyncpa [#allocation4], 1 }
 0x615   :  { %941 = vsyncpa [#allocation7], 1 }
 0x616   :  { %942 = vsyncpa [#allocation5], 1 }

</bundles_post_ra>
